<compile_context>
chip_gen: v7x
topology: tpu7x:2x2x1
jax: 0.10.0
libtpu: 0.0.40
codegen_flags: <defaults>
</compile_context>

<pallas_src>
import math
from functools import partial

import jax
import jax.numpy as jnp
from jax.experimental import pallas as pl
from jax.experimental.pallas import tpu as pltpu


def _layer_norm_f32(h, gamma, beta, eps=1e-5):
    """LayerNorm computed in float32 (matches the fp16-safe LayerNorm subclass)."""
    hf = h.astype(jnp.float32)
    mu = jnp.mean(hf, axis=-1, keepdims=True)
    var = jnp.mean(jnp.square(hf - mu), axis=-1, keepdims=True)
    y = (hf - mu) * jax.lax.rsqrt(var + eps)
    return y * gamma + beta                      # gamma/beta are (1, D)


def _res_block_kernel(x_ref,
                      ln1_g_ref, ln1_b_ref,
                      wqkv_t_ref, bqkv_ref,
                      wo_t_ref, bo_ref,
                      ln2_g_ref, ln2_b_ref,
                      w1_t_ref, b1_ref,
                      w2_t_ref, b2_ref,
                      o_ref, *, n_head):
    x = x_ref[...].astype(jnp.float32)           # (S, D) residual stream, f32
    S, D = x.shape
    Hd = D // n_head
    scale = 1.0 / math.sqrt(Hd)

    # ---------------- x = x + attn(ln_1(x)) ----------------
    h = _layer_norm_f32(x, ln1_g_ref[...], ln1_b_ref[...])
    hb = h.astype(jnp.bfloat16)

    # Fused QKV projection: (S, D) @ (D, 3D) -> (S, 3D), bf16 in / f32 acc.
    qkv = jnp.dot(hb, wqkv_t_ref[...],
                  preferred_element_type=jnp.float32) + bqkv_ref[...]
    qkv_b = qkv.astype(jnp.bfloat16)

    # Per-head attention using static lane slices (no (S,H,Hd) reshape churn).
    # TODO(synk): for large S, tile over KV blocks (flash-style online softmax)
    # instead of materializing the full (S, S) score tile per head.
    ctx_heads = []
    for hh in range(n_head):
        lo = hh * Hd
        q_h = qkv_b[:, lo:lo + Hd]                       # (S, Hd) bf16
        k_h = qkv_b[:, D + lo:D + lo + Hd]               # (S, Hd) bf16
        v_h = qkv_b[:, 2 * D + lo:2 * D + lo + Hd]       # (S, Hd) bf16

        s_h = jax.lax.dot_general(                       # q @ k^T  -> (S, S) f32
            q_h, k_h, (((1,), (1,)), ((), ())),
            preferred_element_type=jnp.float32) * scale
        s_h = s_h - jnp.max(s_h, axis=-1, keepdims=True)
        p_h = jnp.exp(s_h)
        denom = jnp.sum(p_h, axis=-1, keepdims=True)
        p_h = p_h * pl.reciprocal(denom, approx=True)    # EUP divide

        ctx_heads.append(jnp.dot(p_h.astype(jnp.bfloat16), v_h,
                                 preferred_element_type=jnp.float32))
    ctx = jnp.concatenate(ctx_heads, axis=-1)            # (S, D) f32

    attn_out = jnp.dot(ctx.astype(jnp.bfloat16), wo_t_ref[...],
                       preferred_element_type=jnp.float32) + bo_ref[...]
    x = x + attn_out

    # ---------------- x = x + mlp(ln_2(x)) ----------------
    h2 = _layer_norm_f32(x, ln2_g_ref[...], ln2_b_ref[...]).astype(jnp.bfloat16)
    f = jnp.dot(h2, w1_t_ref[...],
                preferred_element_type=jnp.float32) + b1_ref[...]
    f = f * jax.nn.sigmoid(1.702 * f)                    # QuickGELU (f32 EUP)
    m = jnp.dot(f.astype(jnp.bfloat16), w2_t_ref[...],
                preferred_element_type=jnp.float32) + b2_ref[...]
    x = x + m

    o_ref[...] = x.astype(o_ref.dtype)


def prepare_params(raw):
    """Pre-transpose weights (no in-kernel .T), cast weights to bf16,
    keep LN params / biases in f32, reshape 1-D vectors to (1, n)."""
    D = raw["wo"].shape[0]
    wdt = jnp.bfloat16
    f32 = jnp.float32
    return {
        "ln1_g": raw["ln1_g"].astype(f32).reshape(1, D),
        "ln1_b": raw["ln1_b"].astype(f32).reshape(1, D),
        "wqkv_t": raw["wqkv"].T.astype(wdt),             # (D, 3D)
        "bqkv": raw["bqkv"].astype(f32).reshape(1, 3 * D),
        "wo_t": raw["wo"].T.astype(wdt),                 # (D, D)
        "bo": raw["bo"].astype(f32).reshape(1, D),
        "ln2_g": raw["ln2_g"].astype(f32).reshape(1, D),
        "ln2_b": raw["ln2_b"].astype(f32).reshape(1, D),
        "w1_t": raw["w1"].T.astype(wdt),                 # (D, 4D)
        "b1": raw["b1"].astype(f32).reshape(1, 4 * D),
        "w2_t": raw["w2"].T.astype(wdt),                 # (4D, D)
        "b2": raw["b2"].astype(f32).reshape(1, D),
    }


def residual_attention_block_bsd(x_bsd, p, n_head):
    """One ResidualAttentionBlock on x of shape (B, S, D)."""
    B, S, D = x_bsd.shape

    param_arrays = (p["ln1_g"], p["ln1_b"],
                    p["wqkv_t"], p["bqkv"],
                    p["wo_t"], p["bo"],
                    p["ln2_g"], p["ln2_b"],
                    p["w1_t"], p["b1"],
                    p["w2_t"], p["b2"])

    def weight_spec(a):
        # Whole (grid-invariant) parameter resident in VMEM; constant index_map
        # means Pallas does not re-DMA it across grid steps.
        # TODO(synk): pipeline_mode=pl.Buffered(1) would drop the second buffer
        # on v7x (64 MiB VMEM) once that path is universally supported.
        return pl.BlockSpec(a.shape, lambda b, _nd=a.ndim: (0,) * _nd)

    # VMEM budget: weights (+ double-buffer headroom), double-buffered x/out
    # tiles, and rough intermediates (qkv / mlp hidden / per-head scores).
    weight_bytes = sum(int(a.size) * a.dtype.itemsize for a in param_arrays)
    io_bytes = 2 * 2 * S * D * x_bsd.dtype.itemsize          # x + out, 2 buffers
    scratch_bytes = 4 * S * (8 * D) + 4 * S * S + 4 * S * D
    vmem_limit = int(min(128 * 1024 * 1024,
                         max(32 * 1024 * 1024,
                             2 * weight_bytes + io_bytes + 2 * scratch_bytes
                             + (4 << 20))))

    return pl.pallas_call(
        partial(_res_block_kernel, n_head=n_head),
        out_shape=jax.ShapeDtypeStruct((B, S, D), x_bsd.dtype),
        grid_spec=pltpu.PrefetchScalarGridSpec(
            num_scalar_prefetch=0,
            grid=(B,),
            in_specs=[pl.BlockSpec((None, S, D), lambda b: (b, 0, 0))]
                     + [weight_spec(a) for a in param_arrays],
            out_specs=pl.BlockSpec((None, S, D), lambda b: (b, 0, 0)),
        ),
        compiler_params=pltpu.CompilerParams(
            dimension_semantics=("parallel",),
            vmem_limit_bytes=vmem_limit),
    )(x_bsd, *param_arrays)


def transformer_forward(x_sbd, layer_params, n_head):
    """Transformer.forward: x is (S, B, D) like PyTorch; returns (S, B, D).

    The (S,B,D)<->(B,S,D) transposes are done once for the whole layer stack
    (not per block) to minimize HBM traffic.
    """
    x = jnp.transpose(x_sbd, (1, 0, 2))                  # (B, S, D)
    for raw in layer_params:
        x = residual_attention_block_bsd(x, prepare_params(raw), n_head)
    return jnp.transpose(x, (1, 0, 2))                   # (S, B, D)


# ----------------------------- pure-JAX reference -----------------------------

def reference_transformer(x_sbd, layer_params, n_head):
    S, B, D = x_sbd.shape
    Hd = D // n_head

    def ln(h, g, b):
        mu = h.mean(-1, keepdims=True)
        var = ((h - mu) ** 2).mean(-1, keepdims=True)
        return (h - mu) / jnp.sqrt(var + 1e-5) * g + b

    x = x_sbd
    for p in layer_params:
        h = ln(x, p["ln1_g"], p["ln1_b"])
        qkv = h @ p["wqkv"].T + p["bqkv"]
        q, k, v = qkv[..., :D], qkv[..., D:2 * D], qkv[..., 2 * D:]
        q = q.reshape(S, B, n_head, Hd)
        k = k.reshape(S, B, n_head, Hd)
        v = v.reshape(S, B, n_head, Hd)
        s = jnp.einsum('qbhd,kbhd->bhqk', q, k) / math.sqrt(Hd)
        pr = jax.nn.softmax(s, axis=-1)
        ctx = jnp.einsum('bhqk,kbhd->qbhd', pr, v).reshape(S, B, D)
        x = x + ctx @ p["wo"].T + p["bo"]
        h2 = ln(x, p["ln2_g"], p["ln2_b"])
        f = h2 @ p["w1"].T + p["b1"]
        f = f * jax.nn.sigmoid(1.702 * f)
        x = x + f @ p["w2"].T + p["b2"]
    return x


def init_params(key, d_model):
    ks = jax.random.split(key, 8)
    s = 0.02
    return {
        "ln1_g": jnp.ones((d_model,), jnp.float32),
        "ln1_b": jnp.zeros((d_model,), jnp.float32),
        "wqkv": s * jax.random.normal(ks[0], (3 * d_model, d_model), jnp.float32),
        "bqkv": s * jax.random.normal(ks[1], (3 * d_model,), jnp.float32),
        "wo": s * jax.random.normal(ks[2], (d_model, d_model), jnp.float32),
        "bo": s * jax.random.normal(ks[3], (d_model,), jnp.float32),
        "ln2_g": jnp.ones((d_model,), jnp.float32),
        "ln2_b": jnp.zeros((d_model,), jnp.float32),
        "w1": s * jax.random.normal(ks[4], (4 * d_model, d_model), jnp.float32),
        "b1": s * jax.random.normal(ks[5], (4 * d_model,), jnp.float32),
        "w2": s * jax.random.normal(ks[6], (d_model, 4 * d_model), jnp.float32),
        "b2": s * jax.random.normal(ks[7], (d_model,), jnp.float32),
    }


if __name__ == "__main__":
    # TODO(synk): attn_mask=None path only; an additive attn_mask would just be
    # another (S, S) input added to the per-head scores before softmax.
    S, B, D, H, LAYERS = 16, 2, 128, 4, 2       # small but lane-aligned (D = 128)
    key = jax.random.PRNGKey(0)
    kx, kp = jax.random.split(key)
    x = jax.random.normal(kx, (S, B, D), jnp.float32)
    layer_keys = jax.random.split(kp, LAYERS)
    layers = [init_params(k, D) for k in layer_keys]

    fwd = jax.jit(partial(transformer_forward, n_head=H))
    out = jax.block_until_ready(fwd(x, layers))

    ref = reference_transformer(x, layers, H)
    assert out.shape == (S, B, D)
    err = jnp.max(jnp.abs(out - ref))
    # bf16 MXU operands (f32 accumulation) vs. f32 reference -> tolerance 5e-3.
    assert jnp.allclose(out, ref, rtol=5e-3, atol=5e-3), f"max abs err = {err}"
    print("KERNEL_OK")
</pallas_src>

<mosaic_0001>
module attributes {stable_mosaic.version = 11 : i64} {
  func.func @_res_block_kernel(%arg0: i32, %arg1: memref<1x16x128xf32, #tpu.memory_space<vmem>>, %arg2: memref<1x128xf32, #tpu.memory_space<vmem>>, %arg3: memref<1x128xf32, #tpu.memory_space<vmem>>, %arg4: memref<128x384xbf16, #tpu.memory_space<vmem>>, %arg5: memref<1x384xf32, #tpu.memory_space<vmem>>, %arg6: memref<128x128xbf16, #tpu.memory_space<vmem>>, %arg7: memref<1x128xf32, #tpu.memory_space<vmem>>, %arg8: memref<1x128xf32, #tpu.memory_space<vmem>>, %arg9: memref<1x128xf32, #tpu.memory_space<vmem>>, %arg10: memref<128x512xbf16, #tpu.memory_space<vmem>>, %arg11: memref<1x512xf32, #tpu.memory_space<vmem>>, %arg12: memref<512x128xbf16, #tpu.memory_space<vmem>>, %arg13: memref<1x128xf32, #tpu.memory_space<vmem>>, %arg14: memref<1x16x128xf32, #tpu.memory_space<vmem>>) attributes {dimension_semantics = [#tpu.dimension_semantics<parallel>], iteration_bounds = array<i64: 2>, scalar_prefetch = 0 : i64, scratch_operands = 0 : i64, tpu.core_type = #tpu.core_type<tc>, window_params = [{transform_indices = @transform_0, window_bounds = array<i64: 1, 16, 128>}, {pipeline_mode = #tpu.pipeline_mode<synchronous>, transform_indices = @transform_1, window_bounds = array<i64: 1, 128>}, {pipeline_mode = #tpu.pipeline_mode<synchronous>, transform_indices = @transform_2, window_bounds = array<i64: 1, 128>}, {pipeline_mode = #tpu.pipeline_mode<synchronous>, transform_indices = @transform_3, window_bounds = array<i64: 128, 384>}, {pipeline_mode = #tpu.pipeline_mode<synchronous>, transform_indices = @transform_4, window_bounds = array<i64: 1, 384>}, {pipeline_mode = #tpu.pipeline_mode<synchronous>, transform_indices = @transform_5, window_bounds = array<i64: 128, 128>}, {pipeline_mode = #tpu.pipeline_mode<synchronous>, transform_indices = @transform_6, window_bounds = array<i64: 1, 128>}, {pipeline_mode = #tpu.pipeline_mode<synchronous>, transform_indices = @transform_7, window_bounds = array<i64: 1, 128>}, {pipeline_mode = #tpu.pipeline_mode<synchronous>, transform_indices = @transform_8, window_bounds = array<i64: 1, 128>}, {pipeline_mode = #tpu.pipeline_mode<synchronous>, transform_indices = @transform_9, window_bounds = array<i64: 128, 512>}, {pipeline_mode = #tpu.pipeline_mode<synchronous>, transform_indices = @transform_10, window_bounds = array<i64: 1, 512>}, {pipeline_mode = #tpu.pipeline_mode<synchronous>, transform_indices = @transform_11, window_bounds = array<i64: 512, 128>}, {pipeline_mode = #tpu.pipeline_mode<synchronous>, transform_indices = @transform_12, window_bounds = array<i64: 1, 128>}, {transform_indices = @transform_13, window_bounds = array<i64: 1, 16, 128>}]} {
    %c0 = arith.constant 0 : index
    %c0_0 = arith.constant 0 : index
    %c0_1 = arith.constant 0 : index
    %0 = vector.load %arg1[%c0, %c0_0, %c0_1] : memref<1x16x128xf32, #tpu.memory_space<vmem>>, vector<1x16x128xf32>
    %1 = vector.shape_cast %0 : vector<1x16x128xf32> to vector<16x128xf32>
    %c0_2 = arith.constant 0 : index
    %c0_3 = arith.constant 0 : index
    %2 = vector.load %arg2[%c0_2, %c0_3] : memref<1x128xf32, #tpu.memory_space<vmem>>, vector<1x128xf32>
    %c0_4 = arith.constant 0 : index
    %c0_5 = arith.constant 0 : index
    %3 = vector.load %arg3[%c0_4, %c0_5] : memref<1x128xf32, #tpu.memory_space<vmem>>, vector<1x128xf32>
    %cst = arith.constant dense<0.000000e+00> : vector<16xf32>
    %4 = vector.multi_reduction <add>, %1, %cst [1] : vector<16x128xf32> to vector<16xf32>
    %5 = vector.shape_cast %4 : vector<16xf32> to vector<16x1xf32>
    %cst_6 = arith.constant 1.280000e+02 : f32
    %6 = vector.broadcast %cst_6 : f32 to vector<16x1xf32>
    %7 = arith.divf %5, %6 : vector<16x1xf32>
    %8 = vector.broadcast %7 : vector<16x1xf32> to vector<16x128xf32>
    %9 = arith.subf %1, %8 : vector<16x128xf32>
    %10 = arith.mulf %9, %9 : vector<16x128xf32>
    %cst_7 = arith.constant dense<0.000000e+00> : vector<16xf32>
    %11 = vector.multi_reduction <add>, %10, %cst_7 [1] : vector<16x128xf32> to vector<16xf32>
    %12 = vector.shape_cast %11 : vector<16xf32> to vector<16x1xf32>
    %cst_8 = arith.constant 1.280000e+02 : f32
    %13 = vector.broadcast %cst_8 : f32 to vector<16x1xf32>
    %14 = arith.divf %12, %13 : vector<16x1xf32>
    %15 = vector.broadcast %7 : vector<16x1xf32> to vector<16x128xf32>
    %16 = arith.subf %1, %15 : vector<16x128xf32>
    %cst_9 = arith.constant 9.99999974E-6 : f32
    %17 = vector.broadcast %cst_9 : f32 to vector<16x1xf32>
    %18 = arith.addf %14, %17 : vector<16x1xf32>
    %19 = math.rsqrt %18 : vector<16x1xf32>
    %20 = vector.broadcast %19 : vector<16x1xf32> to vector<16x128xf32>
    %21 = arith.mulf %16, %20 : vector<16x128xf32>
    %22 = vector.broadcast %2 : vector<1x128xf32> to vector<16x128xf32>
    %23 = arith.mulf %21, %22 : vector<16x128xf32>
    %24 = vector.broadcast %3 : vector<1x128xf32> to vector<16x128xf32>
    %25 = arith.addf %23, %24 : vector<16x128xf32>
    %26 = arith.truncf %25 : vector<16x128xf32> to vector<16x128xbf16>
    %c0_10 = arith.constant 0 : index
    %c0_11 = arith.constant 0 : index
    %27 = vector.load %arg4[%c0_10, %c0_11] : memref<128x384xbf16, #tpu.memory_space<vmem>>, vector<128x384xbf16>
    %cst_12 = arith.constant dense<0.000000e+00> : vector<16x384xf32>
    %28 = tpu.matmul %26, %27, %cst_12 {dimension_numbers = #tpu.dot_dimension_numbers<[1], [0], [0], [1], [0, 0, 1, 1], [], []>} : vector<16x128xbf16>, vector<128x384xbf16>, vector<16x384xf32> -> vector<16x384xf32>
    %c0_13 = arith.constant 0 : index
    %c0_14 = arith.constant 0 : index
    %29 = vector.load %arg5[%c0_13, %c0_14] : memref<1x384xf32, #tpu.memory_space<vmem>>, vector<1x384xf32>
    %30 = vector.broadcast %29 : vector<1x384xf32> to vector<16x384xf32>
    %31 = arith.addf %28, %30 : vector<16x384xf32>
    %32 = arith.truncf %31 : vector<16x384xf32> to vector<16x384xbf16>
    %33 = vector.extract_strided_slice %32 {offsets = [0, 0], sizes = [16, 32], strides = [1, 1]} : vector<16x384xbf16> to vector<16x32xbf16>
    %34 = vector.extract_strided_slice %32 {offsets = [0, 128], sizes = [16, 32], strides = [1, 1]} : vector<16x384xbf16> to vector<16x32xbf16>
    %35 = vector.extract_strided_slice %32 {offsets = [0, 256], sizes = [16, 32], strides = [1, 1]} : vector<16x384xbf16> to vector<16x32xbf16>
    %cst_15 = arith.constant dense<0.000000e+00> : vector<16x16xf32>
    %36 = tpu.matmul %33, %34, %cst_15 {dimension_numbers = #tpu.dot_dimension_numbers<[1], [1], [0], [0], [0, 0, 1, 0], [], []>} : vector<16x32xbf16>, vector<16x32xbf16>, vector<16x16xf32> -> vector<16x16xf32>
    %cst_16 = arith.constant 0.176776692 : f32
    %37 = vector.broadcast %cst_16 : f32 to vector<16x16xf32>
    %38 = arith.mulf %36, %37 : vector<16x16xf32>
    %cst_17 = arith.constant dense<0xFF800000> : vector<16xf32>
    %39 = vector.multi_reduction <maximumf>, %38, %cst_17 [1] : vector<16x16xf32> to vector<16xf32>
    %40 = vector.shape_cast %39 : vector<16xf32> to vector<16x1xf32>
    %41 = vector.broadcast %40 : vector<16x1xf32> to vector<16x16xf32>
    %42 = arith.subf %38, %41 : vector<16x16xf32>
    %43 = math.exp %42 : vector<16x16xf32>
    %cst_18 = arith.constant dense<0.000000e+00> : vector<16xf32>
    %44 = vector.multi_reduction <add>, %43, %cst_18 [1] : vector<16x16xf32> to vector<16xf32>
    %45 = vector.shape_cast %44 : vector<16xf32> to vector<16x1xf32>
    %46 = tpu.reciprocal %45 {approx = true} : vector<16x1xf32> -> vector<16x1xf32>
    %47 = vector.broadcast %46 : vector<16x1xf32> to vector<16x16xf32>
    %48 = arith.mulf %43, %47 : vector<16x16xf32>
    %49 = arith.truncf %48 : vector<16x16xf32> to vector<16x16xbf16>
    %cst_19 = arith.constant dense<0.000000e+00> : vector<16x32xf32>
    %50 = tpu.matmul %49, %35, %cst_19 {dimension_numbers = #tpu.dot_dimension_numbers<[1], [0], [0], [1], [0, 0, 1, 1], [], []>} : vector<16x16xbf16>, vector<16x32xbf16>, vector<16x32xf32> -> vector<16x32xf32>
    %51 = vector.extract_strided_slice %32 {offsets = [0, 32], sizes = [16, 32], strides = [1, 1]} : vector<16x384xbf16> to vector<16x32xbf16>
    %52 = vector.extract_strided_slice %32 {offsets = [0, 160], sizes = [16, 32], strides = [1, 1]} : vector<16x384xbf16> to vector<16x32xbf16>
    %53 = vector.extract_strided_slice %32 {offsets = [0, 288], sizes = [16, 32], strides = [1, 1]} : vector<16x384xbf16> to vector<16x32xbf16>
    %cst_20 = arith.constant dense<0.000000e+00> : vector<16x16xf32>
    %54 = tpu.matmul %51, %52, %cst_20 {dimension_numbers = #tpu.dot_dimension_numbers<[1], [1], [0], [0], [0, 0, 1, 0], [], []>} : vector<16x32xbf16>, vector<16x32xbf16>, vector<16x16xf32> -> vector<16x16xf32>
    %cst_21 = arith.constant 0.176776692 : f32
    %55 = vector.broadcast %cst_21 : f32 to vector<16x16xf32>
    %56 = arith.mulf %54, %55 : vector<16x16xf32>
    %cst_22 = arith.constant dense<0xFF800000> : vector<16xf32>
    %57 = vector.multi_reduction <maximumf>, %56, %cst_22 [1] : vector<16x16xf32> to vector<16xf32>
    %58 = vector.shape_cast %57 : vector<16xf32> to vector<16x1xf32>
    %59 = vector.broadcast %58 : vector<16x1xf32> to vector<16x16xf32>
    %60 = arith.subf %56, %59 : vector<16x16xf32>
    %61 = math.exp %60 : vector<16x16xf32>
    %cst_23 = arith.constant dense<0.000000e+00> : vector<16xf32>
    %62 = vector.multi_reduction <add>, %61, %cst_23 [1] : vector<16x16xf32> to vector<16xf32>
    %63 = vector.shape_cast %62 : vector<16xf32> to vector<16x1xf32>
    %64 = tpu.reciprocal %63 {approx = true} : vector<16x1xf32> -> vector<16x1xf32>
    %65 = vector.broadcast %64 : vector<16x1xf32> to vector<16x16xf32>
    %66 = arith.mulf %61, %65 : vector<16x16xf32>
    %67 = arith.truncf %66 : vector<16x16xf32> to vector<16x16xbf16>
    %cst_24 = arith.constant dense<0.000000e+00> : vector<16x32xf32>
    %68 = tpu.matmul %67, %53, %cst_24 {dimension_numbers = #tpu.dot_dimension_numbers<[1], [0], [0], [1], [0, 0, 1, 1], [], []>} : vector<16x16xbf16>, vector<16x32xbf16>, vector<16x32xf32> -> vector<16x32xf32>
    %69 = vector.extract_strided_slice %32 {offsets = [0, 64], sizes = [16, 32], strides = [1, 1]} : vector<16x384xbf16> to vector<16x32xbf16>
    %70 = vector.extract_strided_slice %32 {offsets = [0, 192], sizes = [16, 32], strides = [1, 1]} : vector<16x384xbf16> to vector<16x32xbf16>
    %71 = vector.extract_strided_slice %32 {offsets = [0, 320], sizes = [16, 32], strides = [1, 1]} : vector<16x384xbf16> to vector<16x32xbf16>
    %cst_25 = arith.constant dense<0.000000e+00> : vector<16x16xf32>
    %72 = tpu.matmul %69, %70, %cst_25 {dimension_numbers = #tpu.dot_dimension_numbers<[1], [1], [0], [0], [0, 0, 1, 0], [], []>} : vector<16x32xbf16>, vector<16x32xbf16>, vector<16x16xf32> -> vector<16x16xf32>
    %cst_26 = arith.constant 0.176776692 : f32
    %73 = vector.broadcast %cst_26 : f32 to vector<16x16xf32>
    %74 = arith.mulf %72, %73 : vector<16x16xf32>
    %cst_27 = arith.constant dense<0xFF800000> : vector<16xf32>
    %75 = vector.multi_reduction <maximumf>, %74, %cst_27 [1] : vector<16x16xf32> to vector<16xf32>
    %76 = vector.shape_cast %75 : vector<16xf32> to vector<16x1xf32>
    %77 = vector.broadcast %76 : vector<16x1xf32> to vector<16x16xf32>
    %78 = arith.subf %74, %77 : vector<16x16xf32>
    %79 = math.exp %78 : vector<16x16xf32>
    %cst_28 = arith.constant dense<0.000000e+00> : vector<16xf32>
    %80 = vector.multi_reduction <add>, %79, %cst_28 [1] : vector<16x16xf32> to vector<16xf32>
    %81 = vector.shape_cast %80 : vector<16xf32> to vector<16x1xf32>
    %82 = tpu.reciprocal %81 {approx = true} : vector<16x1xf32> -> vector<16x1xf32>
    %83 = vector.broadcast %82 : vector<16x1xf32> to vector<16x16xf32>
    %84 = arith.mulf %79, %83 : vector<16x16xf32>
    %85 = arith.truncf %84 : vector<16x16xf32> to vector<16x16xbf16>
    %cst_29 = arith.constant dense<0.000000e+00> : vector<16x32xf32>
    %86 = tpu.matmul %85, %71, %cst_29 {dimension_numbers = #tpu.dot_dimension_numbers<[1], [0], [0], [1], [0, 0, 1, 1], [], []>} : vector<16x16xbf16>, vector<16x32xbf16>, vector<16x32xf32> -> vector<16x32xf32>
    %87 = vector.extract_strided_slice %32 {offsets = [0, 96], sizes = [16, 32], strides = [1, 1]} : vector<16x384xbf16> to vector<16x32xbf16>
    %88 = vector.extract_strided_slice %32 {offsets = [0, 224], sizes = [16, 32], strides = [1, 1]} : vector<16x384xbf16> to vector<16x32xbf16>
    %89 = vector.extract_strided_slice %32 {offsets = [0, 352], sizes = [16, 32], strides = [1, 1]} : vector<16x384xbf16> to vector<16x32xbf16>
    %cst_30 = arith.constant dense<0.000000e+00> : vector<16x16xf32>
    %90 = tpu.matmul %87, %88, %cst_30 {dimension_numbers = #tpu.dot_dimension_numbers<[1], [1], [0], [0], [0, 0, 1, 0], [], []>} : vector<16x32xbf16>, vector<16x32xbf16>, vector<16x16xf32> -> vector<16x16xf32>
    %cst_31 = arith.constant 0.176776692 : f32
    %91 = vector.broadcast %cst_31 : f32 to vector<16x16xf32>
    %92 = arith.mulf %90, %91 : vector<16x16xf32>
    %cst_32 = arith.constant dense<0xFF800000> : vector<16xf32>
    %93 = vector.multi_reduction <maximumf>, %92, %cst_32 [1] : vector<16x16xf32> to vector<16xf32>
    %94 = vector.shape_cast %93 : vector<16xf32> to vector<16x1xf32>
    %95 = vector.broadcast %94 : vector<16x1xf32> to vector<16x16xf32>
    %96 = arith.subf %92, %95 : vector<16x16xf32>
    %97 = math.exp %96 : vector<16x16xf32>
    %cst_33 = arith.constant dense<0.000000e+00> : vector<16xf32>
    %98 = vector.multi_reduction <add>, %97, %cst_33 [1] : vector<16x16xf32> to vector<16xf32>
    %99 = vector.shape_cast %98 : vector<16xf32> to vector<16x1xf32>
    %100 = tpu.reciprocal %99 {approx = true} : vector<16x1xf32> -> vector<16x1xf32>
    %101 = vector.broadcast %100 : vector<16x1xf32> to vector<16x16xf32>
    %102 = arith.mulf %97, %101 : vector<16x16xf32>
    %103 = arith.truncf %102 : vector<16x16xf32> to vector<16x16xbf16>
    %cst_34 = arith.constant dense<0.000000e+00> : vector<16x32xf32>
    %104 = tpu.matmul %103, %89, %cst_34 {dimension_numbers = #tpu.dot_dimension_numbers<[1], [0], [0], [1], [0, 0, 1, 1], [], []>} : vector<16x16xbf16>, vector<16x32xbf16>, vector<16x32xf32> -> vector<16x32xf32>
    %105 = tpu.concatenate %50, %68, %86, %104 in 1 : vector<16x32xf32>, vector<16x32xf32>, vector<16x32xf32>, vector<16x32xf32> -> vector<16x128xf32>
    %106 = arith.truncf %105 : vector<16x128xf32> to vector<16x128xbf16>
    %c0_35 = arith.constant 0 : index
    %c0_36 = arith.constant 0 : index
    %107 = vector.load %arg6[%c0_35, %c0_36] : memref<128x128xbf16, #tpu.memory_space<vmem>>, vector<128x128xbf16>
    %cst_37 = arith.constant dense<0.000000e+00> : vector<16x128xf32>
    %108 = tpu.matmul %106, %107, %cst_37 {dimension_numbers = #tpu.dot_dimension_numbers<[1], [0], [0], [1], [0, 0, 1, 1], [], []>} : vector<16x128xbf16>, vector<128x128xbf16>, vector<16x128xf32> -> vector<16x128xf32>
    %c0_38 = arith.constant 0 : index
    %c0_39 = arith.constant 0 : index
    %109 = vector.load %arg7[%c0_38, %c0_39] : memref<1x128xf32, #tpu.memory_space<vmem>>, vector<1x128xf32>
    %110 = vector.broadcast %109 : vector<1x128xf32> to vector<16x128xf32>
    %111 = arith.addf %108, %110 : vector<16x128xf32>
    %112 = arith.addf %1, %111 : vector<16x128xf32>
    %c0_40 = arith.constant 0 : index
    %c0_41 = arith.constant 0 : index
    %113 = vector.load %arg8[%c0_40, %c0_41] : memref<1x128xf32, #tpu.memory_space<vmem>>, vector<1x128xf32>
    %c0_42 = arith.constant 0 : index
    %c0_43 = arith.constant 0 : index
    %114 = vector.load %arg9[%c0_42, %c0_43] : memref<1x128xf32, #tpu.memory_space<vmem>>, vector<1x128xf32>
    %cst_44 = arith.constant dense<0.000000e+00> : vector<16xf32>
    %115 = vector.multi_reduction <add>, %112, %cst_44 [1] : vector<16x128xf32> to vector<16xf32>
    %116 = vector.shape_cast %115 : vector<16xf32> to vector<16x1xf32>
    %cst_45 = arith.constant 1.280000e+02 : f32
    %117 = vector.broadcast %cst_45 : f32 to vector<16x1xf32>
    %118 = arith.divf %116, %117 : vector<16x1xf32>
    %119 = vector.broadcast %118 : vector<16x1xf32> to vector<16x128xf32>
    %120 = arith.subf %112, %119 : vector<16x128xf32>
    %121 = arith.mulf %120, %120 : vector<16x128xf32>
    %cst_46 = arith.constant dense<0.000000e+00> : vector<16xf32>
    %122 = vector.multi_reduction <add>, %121, %cst_46 [1] : vector<16x128xf32> to vector<16xf32>
    %123 = vector.shape_cast %122 : vector<16xf32> to vector<16x1xf32>
    %cst_47 = arith.constant 1.280000e+02 : f32
    %124 = vector.broadcast %cst_47 : f32 to vector<16x1xf32>
    %125 = arith.divf %123, %124 : vector<16x1xf32>
    %126 = vector.broadcast %118 : vector<16x1xf32> to vector<16x128xf32>
    %127 = arith.subf %112, %126 : vector<16x128xf32>
    %cst_48 = arith.constant 9.99999974E-6 : f32
    %128 = vector.broadcast %cst_48 : f32 to vector<16x1xf32>
    %129 = arith.addf %125, %128 : vector<16x1xf32>
    %130 = math.rsqrt %129 : vector<16x1xf32>
    %131 = vector.broadcast %130 : vector<16x1xf32> to vector<16x128xf32>
    %132 = arith.mulf %127, %131 : vector<16x128xf32>
    %133 = vector.broadcast %113 : vector<1x128xf32> to vector<16x128xf32>
    %134 = arith.mulf %132, %133 : vector<16x128xf32>
    %135 = vector.broadcast %114 : vector<1x128xf32> to vector<16x128xf32>
    %136 = arith.addf %134, %135 : vector<16x128xf32>
    %137 = arith.truncf %136 : vector<16x128xf32> to vector<16x128xbf16>
    %c0_49 = arith.constant 0 : index
    %c0_50 = arith.constant 0 : index
    %138 = vector.load %arg10[%c0_49, %c0_50] : memref<128x512xbf16, #tpu.memory_space<vmem>>, vector<128x512xbf16>
    %cst_51 = arith.constant dense<0.000000e+00> : vector<16x512xf32>
    %139 = tpu.matmul %137, %138, %cst_51 {dimension_numbers = #tpu.dot_dimension_numbers<[1], [0], [0], [1], [0, 0, 1, 1], [], []>} : vector<16x128xbf16>, vector<128x512xbf16>, vector<16x512xf32> -> vector<16x512xf32>
    %c0_52 = arith.constant 0 : index
    %c0_53 = arith.constant 0 : index
    %140 = vector.load %arg11[%c0_52, %c0_53] : memref<1x512xf32, #tpu.memory_space<vmem>>, vector<1x512xf32>
    %141 = vector.broadcast %140 : vector<1x512xf32> to vector<16x512xf32>
    %142 = arith.addf %139, %141 : vector<16x512xf32>
    %cst_54 = arith.constant 1.702000e+00 : f32
    %143 = vector.broadcast %cst_54 : f32 to vector<16x512xf32>
    %144 = arith.mulf %143, %142 : vector<16x512xf32>
    %145 = arith.negf %144 : vector<16x512xf32>
    %146 = math.exp %145 : vector<16x512xf32>
    %cst_55 = arith.constant 1.000000e+00 : f32
    %147 = vector.broadcast %cst_55 : f32 to vector<16x512xf32>
    %148 = arith.addf %147, %146 : vector<16x512xf32>
    %149 = arith.divf %147, %148 : vector<16x512xf32>
    %150 = arith.mulf %142, %149 : vector<16x512xf32>
    %151 = arith.truncf %150 : vector<16x512xf32> to vector<16x512xbf16>
    %c0_56 = arith.constant 0 : index
    %c0_57 = arith.constant 0 : index
    %152 = vector.load %arg12[%c0_56, %c0_57] : memref<512x128xbf16, #tpu.memory_space<vmem>>, vector<512x128xbf16>
    %cst_58 = arith.constant dense<0.000000e+00> : vector<16x128xf32>
    %153 = tpu.matmul %151, %152, %cst_58 {dimension_numbers = #tpu.dot_dimension_numbers<[1], [0], [0], [1], [0, 0, 1, 1], [], []>} : vector<16x512xbf16>, vector<512x128xbf16>, vector<16x128xf32> -> vector<16x128xf32>
    %c0_59 = arith.constant 0 : index
    %c0_60 = arith.constant 0 : index
    %154 = vector.load %arg13[%c0_59, %c0_60] : memref<1x128xf32, #tpu.memory_space<vmem>>, vector<1x128xf32>
    %155 = vector.broadcast %154 : vector<1x128xf32> to vector<16x128xf32>
    %156 = arith.addf %153, %155 : vector<16x128xf32>
    %157 = arith.addf %112, %156 : vector<16x128xf32>
    %c0_61 = arith.constant 0 : index
    %c0_62 = arith.constant 0 : index
    %c0_63 = arith.constant 0 : index
    %158 = vector.load %arg14[%c0_61, %c0_62, %c0_63] : memref<1x16x128xf32, #tpu.memory_space<vmem>>, vector<1x16x128xf32>
    %159 = vector.shape_cast %158 : vector<1x16x128xf32> to vector<16x128xf32>
    %160 = vector.shape_cast %157 : vector<16x128xf32> to vector<1x16x128xf32>
    tpu.vector_store %arg14[%c0_61, %c0_62, %c0_63], %160 {strides = array<i32>} : memref<1x16x128xf32, #tpu.memory_space<vmem>>, vector<1x16x128xf32>,
    return
  }
  func.func @transform_0(%arg0: i32) -> (i32, i32, i32) {
    %c0_i32 = arith.constant 0 : i32
    %c0_i32_0 = arith.constant 0 : i32
    %c0_i32_1 = arith.constant 0 : i32
    return %arg0, %c0_i32, %c0_i32_0 : i32, i32, i32
  }
  func.func @transform_1(%arg0: i32) -> (i32, i32) {
    %c0_i32 = arith.constant 0 : i32
    %c0_i32_0 = arith.constant 0 : i32
    %c0_i32_1 = arith.constant 0 : i32
    return %c0_i32, %c0_i32_0 : i32, i32
  }
  func.func @transform_2(%arg0: i32) -> (i32, i32) {
    %c0_i32 = arith.constant 0 : i32
    %c0_i32_0 = arith.constant 0 : i32
    %c0_i32_1 = arith.constant 0 : i32
    return %c0_i32, %c0_i32_0 : i32, i32
  }
  func.func @transform_3(%arg0: i32) -> (i32, i32) {
    %c0_i32 = arith.constant 0 : i32
    %c0_i32_0 = arith.constant 0 : i32
    %c0_i32_1 = arith.constant 0 : i32
    return %c0_i32, %c0_i32_0 : i32, i32
  }
  func.func @transform_4(%arg0: i32) -> (i32, i32) {
    %c0_i32 = arith.constant 0 : i32
    %c0_i32_0 = arith.constant 0 : i32
    %c0_i32_1 = arith.constant 0 : i32
    return %c0_i32, %c0_i32_0 : i32, i32
  }
  func.func @transform_5(%arg0: i32) -> (i32, i32) {
    %c0_i32 = arith.constant 0 : i32
    %c0_i32_0 = arith.constant 0 : i32
    %c0_i32_1 = arith.constant 0 : i32
    return %c0_i32, %c0_i32_0 : i32, i32
  }
  func.func @transform_6(%arg0: i32) -> (i32, i32) {
    %c0_i32 = arith.constant 0 : i32
    %c0_i32_0 = arith.constant 0 : i32
    %c0_i32_1 = arith.constant 0 : i32
    return %c0_i32, %c0_i32_0 : i32, i32
  }
  func.func @transform_7(%arg0: i32) -> (i32, i32) {
    %c0_i32 = arith.constant 0 : i32
    %c0_i32_0 = arith.constant 0 : i32
    %c0_i32_1 = arith.constant 0 : i32
    return %c0_i32, %c0_i32_0 : i32, i32
  }
  func.func @transform_8(%arg0: i32) -> (i32, i32) {
    %c0_i32 = arith.constant 0 : i32
    %c0_i32_0 = arith.constant 0 : i32
    %c0_i32_1 = arith.constant 0 : i32
    return %c0_i32, %c0_i32_0 : i32, i32
  }
  func.func @transform_9(%arg0: i32) -> (i32, i32) {
    %c0_i32 = arith.constant 0 : i32
    %c0_i32_0 = arith.constant 0 : i32
    %c0_i32_1 = arith.constant 0 : i32
    return %c0_i32, %c0_i32_0 : i32, i32
  }
  func.func @transform_10(%arg0: i32) -> (i32, i32) {
    %c0_i32 = arith.constant 0 : i32
    %c0_i32_0 = arith.constant 0 : i32
    %c0_i32_1 = arith.constant 0 : i32
    return %c0_i32, %c0_i32_0 : i32, i32
  }
  func.func @transform_11(%arg0: i32) -> (i32, i32) {
    %c0_i32 = arith.constant 0 : i32
    %c0_i32_0 = arith.constant 0 : i32
    %c0_i32_1 = arith.constant 0 : i32
    return %c0_i32, %c0_i32_0 : i32, i32
  }
  func.func @transform_12(%arg0: i32) -> (i32, i32) {
    %c0_i32 = arith.constant 0 : i32
    %c0_i32_0 = arith.constant 0 : i32
    %c0_i32_1 = arith.constant 0 : i32
    return %c0_i32, %c0_i32_0 : i32, i32
  }
  func.func @transform_13(%arg0: i32) -> (i32, i32, i32) {
    %c0_i32 = arith.constant 0 : i32
    %c0_i32_0 = arith.constant 0 : i32
    %c0_i32_1 = arith.constant 0 : i32
    return %arg0, %c0_i32, %c0_i32_0 : i32, i32, i32
  }
}

</mosaic_0001>

<bundles_post_ra>
// kernel: transformer_forward.2
= control target key start
LH: loop header
LB: loop body
LE: loop exit
PB: predicated region body
PF: predicated region fallthrough
CT: control target
= control target key end

     0   :  { %s2804_s25 = smov 0   ;;  %s3311_s0 = inlined_call_operand.vmem [shape: f32[2,16,128], index: 0, kind: input, shape index: {}]   ;;  %s3312_s1 = inlined_call_operand.vmem [shape: f32[1,128], index: 1, kind: input, shape index: {}]   ;;  %s3313_s2 = inlined_call_operand.vmem [shape: f32[1,128], index: 2, kind: input, shape index: {}]   ;;  %s3314_s3 = inlined_call_operand.vmem [shape: bf16[128,384], index: 3, kind: input, shape index: {}]   ;;  %s3315_s4 = inlined_call_operand.vmem [shape: f32[1,384], index: 4, kind: input, shape index: {}]   ;;  %s3316_s5 = inlined_call_operand.vmem [shape: bf16[128,128], index: 5, kind: input, shape index: {}]   ;;  %s3317_s6 = inlined_call_operand.vmem [shape: f32[1,128], index: 6, kind: input, shape index: {}]   ;;  %s3318_s7 = inlined_call_operand.vmem [shape: f32[1,128], index: 7, kind: input, shape index: {}]   ;;  %s3319_s8 = inlined_call_operand.vmem [shape: f32[1,128], index: 8, kind: input, shape index: {}]   ;;  %s3320_s9 = inlined_call_operand.vmem [shape: bf16[128,512], index: 9, kind: input, shape index: {}]   ;;  %s3321_s10 = inlined_call_operand.vmem [shape: f32[1,512], index: 10, kind: input, shape index: {}]   ;;  %s3322_s11 = inlined_call_operand.vmem [shape: bf16[512,128], index: 11, kind: input, shape index: {}]   ;;  %s3323_s12 = inlined_call_operand.vmem [shape: f32[1,128], index: 12, kind: input, shape index: {}]   ;;  %s3324_s13 = inlined_call_operand.vmem [shape: f32[2,16,128], index: 13, kind: output, shape index: {}]  }
   0x1 LB: > { %s2200_s26 = sadd.s32 4294967295, %s2726_s25   ;;  %p2204_p0 = scmp.ge.s32.totalorder %s2726_s25, 1  ;;  %s2726_s25 = sphi %s2804_s25, %s23_s25  }
   0x2   : > { %p387_p1 = scmp.lt.s32.totalorder %s2726_s25, 3 }
   0x4   : > { %p388_p2 = pnand %p2204_p0, %p387_p1 }
   0x5   : > { %p431_p3 = scmp.lt.s32.totalorder (!%p388_p2), %s2200_s26, 1  ;;  %v2526_v2 = vld [vmem:[%s3314_s3 + $0x4] ss:$12 sps:$4 sm:$0xff] (!%p388_p2)   ;;  %v2528_v3 = vld [vmem:[%s3314_s3] ss:$12 sps:$4 sm:$0xff] (!%p388_p2)   ;;  %v2728_v4 = vmov (!%p388_p2), 0.0   ;;  %v520_v53 = vlaneseq (!%p388_p2) }
   0x6   : > { %391 = sbr.rel (%p388_p2) target bundleno = 3010 (0xbc2), region = 72  ;;  %2409 = vmatprep.subr.bf16.mxu1 (!%p388_p2), %v2728_v4  ;;  %v2529_v5 = vld [vmem:[%s3314_s3 + $0x8] ss:$12 sps:$4 sm:$0xff] (!%p388_p2)   ;;  %663 = vmatprep.subr.bf16.mxu0 (!%p388_p2), %v2526_v2  ;;  %v2532_v15 = vld [vmem:[%s3314_s3 + $0x18] ss:$12 sps:$4 sm:$0xff] (!%p388_p2)   ;;  %v2729_v30 = vmov (!%p388_p2), 0  }
   0x7   : > { %v2530_v6 = vld [vmem:[%s3314_s3 + $0x1c] ss:$12 sps:$4 sm:$0xff] (!%p388_p2)   ;;  %664 = vmatpush1.bf16.msra.mxu0 (!%p388_p2), %v2528_v3  ;;  %2410 = vmatpush3.bf16.msra.mxu1 (!%p388_p2), %v2529_v5  ;;  %v2533_v16 = vld [vmem:[%s3314_s3 + $0x20] ss:$12 sps:$4 sm:$0xff] (!%p388_p2)   ;;  %v2537_v19 = vld [vmem:[%s3314_s3 + $0x38] ss:$12 sps:$4 sm:$0xff] (!%p388_p2)  }
   0x8   : > { %665 = vmatprep.subr.bf16.mxu0 (!%p388_p2), %v2530_v6  ;;  %2411 = vmatprep.subr.bf16.mxu1 (!%p388_p2), %v2728_v4  ;;  %v2534_v17 = vld [vmem:[%s3314_s3 + $0x34] ss:$12 sps:$4 sm:$0xff] (!%p388_p2)   ;;  %v2536_v18 = vld [vmem:[%s3314_s3 + $0x30] ss:$12 sps:$4 sm:$0xff] (!%p388_p2)   ;;  %v2538_v20 = vld [vmem:[%s3314_s3 + $0x4c] ss:$12 sps:$4 sm:$0xff] (!%p388_p2)  }
   0x9   : > { %v2540_v21 = vld [vmem:[%s3314_s3 + $0x48] ss:$12 sps:$4 sm:$0xff] (!%p388_p2)   ;;  %v2541_v22 = vld [vmem:[%s3314_s3 + $0x50] ss:$12 sps:$4 sm:$0xff] (!%p388_p2)   ;;  %v2544_v24 = vld [vmem:[%s3314_s3 + $0x60] ss:$12 sps:$4 sm:$0xff] (!%p388_p2)   ;;  %695 = vmatprep.mubr.bf16.mxu0 (!%p388_p2), %v2729_v30 }
   0xa   : > { %v2542_v23 = vld [vmem:[%s3314_s3 + $0x64] ss:$12 sps:$4 sm:$0xff] (!%p388_p2)   ;;  %v2545_v25 = vld [vmem:[%s3314_s3 + $0x68] ss:$12 sps:$4 sm:$0xff] (!%p388_p2)   ;;  %v2549_v28 = vld [vmem:[%s3314_s3 + $0x80] ss:$12 sps:$4 sm:$0xff] (!%p388_p2)  }
   0xb   : > { %666 = vmatpush1.bf16.msra.mxu0 (!%p388_p2), %v2532_v15  ;;  %2412 = vmatpush3.bf16.msra.mxu1 (!%p388_p2), %v2533_v16  ;;  %v2546_v26 = vld [vmem:[%s3314_s3 + $0x7c] ss:$12 sps:$4 sm:$0xff] (!%p388_p2)   ;;  %v2548_v27 = vld [vmem:[%s3314_s3 + $0x78] ss:$12 sps:$4 sm:$0xff] (!%p388_p2)   ;;  %v2550_v29 = vld [vmem:[%s3314_s3 + $0x94] ss:$12 sps:$4 sm:$0xff] (!%p388_p2)  }
   0xc   : > { %2413 = vmatprep.subr.bf16.mxu1 (!%p388_p2), %v2728_v4  ;;  %667 = vmatprep.subr.bf16.mxu0 (!%p388_p2), %v2534_v17  ;;  %vm2730_vm0 = vmmov (!%p388_p2), 0   ;;  %v2552_v31 = vld [vmem:[%s3314_s3 + $0x90] ss:$12 sps:$4 sm:$0xff] (!%p388_p2)   ;;  %v2553_v32 = vld [vmem:[%s3314_s3 + $0x98] ss:$12 sps:$4 sm:$0xff] (!%p388_p2)   ;;  %v2929_v54 = vshrl.u32 (!%p388_p2), %v520_v53, 7 }
   0xd   : > { %s3326_s26 = smov (!%p431_p3, %s2200_s26), 1  ;;  %2425 = vmatprep.mubr.msk.bf16.mxu1 %vm2730_vm0, %v2728_v4  ;;  %v2554_v33 = vld [vmem:[%s3314_s3 + $0xac] ss:$12 sps:$4 sm:$0xff]   ;;  %v2556_v34 = vld [vmem:[%s3314_s3 + $0xa8] ss:$12 sps:$4 sm:$0xff]   ;;  %vm750_vm1 = vcmask 261120  }
   0xe   : > { %s2329_s27 = sshll.u32 %s3326_s26, 4  ;;  %v2557_v35 = vld [vmem:[%s3314_s3 + $0xb0] ss:$12 sps:$4 sm:$0xff]   ;;  %v2209_v44 = vld [vmem:[%s3312_s1] ss:$0 sm:$0xff]  ;;  %v522_v55 = vsub.s32 0, %v2929_v54 }
   0xf   : > { %s2820_s30 = scalar_lea.vmem %s3311_s0, %s2329_s27  ;;  %668 = vmatpush1.bf16.msra.mxu0 %v2536_v18  ;;  %2414 = vmatpush3.bf16.msra.mxu1 %v2537_v19  ;;  %v2210_v48 = vld [vmem:[%s3313_s2] ss:$0 sm:$0xff]  ;;  %v530_v56 = vsub.s32 2, %v2929_v54  ;;  %v526_v58 = vsub.s32 1, %v2929_v54  ;;  %vm800_vm2 = vcmask 130048   ;;  %s2731_s16 = smov 96  }
  0x10   : > { %v442_v0 = vld [vmem:[%s2820_s30] sm:$0xff]  ;;  %v443_v1 = vld [vmem:[%s2820_s30 + $0x8] sm:$0xff]  ;;  %2415 = vmatprep.subr.bf16.mxu1 %v2728_v4  ;;  %669 = vmatprep.subr.bf16.mxu0 %v2538_v20  ;;  %s2732_s17 = smov 64   ;;  %s2733_s18 = smov 32   ;;  %vm1266_vm3 = vcmask 523264   ;;  %vm1269_vm4 = vcmask 785408  }
  0x11   : > { %446 = vadd.xlane.f32.xlu0 %v442_v0  ;;  %v518_v57 = vld [vmem:[%s3315_s4] sm:$0x7] }
  0x12   : > { %v523_v59 = vrot.slane %v518_v57, %v522_v55  ;;  %v531_v60 = vrot.slane %v518_v57, %v530_v56  ;;  %v527_v63 = vrot.slane %v518_v57, %v526_v58 }
  0x13   : > { %670 = vmatpush1.bf16.msra.mxu0 %v2540_v21  ;;  %2416 = vmatpush3.bf16.msra.mxu1 %v2541_v22 }
  0x14   : > { %2417 = vmatprep.subr.bf16.mxu1 %v2728_v4  ;;  %671 = vmatprep.subr.bf16.mxu0 %v2542_v23 }
  0x15   : > { %448 = vadd.xlane.f32.xlu0 %v443_v1 }
  0x17   : > { %672 = vmatpush1.bf16.msra.mxu0 %v2544_v24  ;;  %2418 = vmatpush3.bf16.msra.mxu1 %v2545_v25 }
  0x18   : > { %673 = vmatprep.subr.bf16.mxu0 %v2546_v26  ;;  %2419 = vmatprep.subr.bf16.mxu1 %v2728_v4 }
  0x1b   : > { %674 = vmatpush1.bf16.msra.mxu0 %v2548_v27  ;;  %2420 = vmatpush3.bf16.msra.mxu1 %v2549_v28 }
  0x1c   : > { %675 = vmatprep.subr.bf16.mxu0 %v2550_v29  ;;  %2421 = vmatprep.subr.bf16.mxu1 %v2728_v4 }
  0x1f   : > { %676 = vmatpush1.bf16.msra.mxu0 %v2552_v31  ;;  %2422 = vmatpush3.bf16.msra.mxu1 %v2553_v32 }
  0x20   : > { %677 = vmatprep.subr.bf16.mxu0 %v2554_v33  ;;  %2423 = vmatprep.subr.bf16.mxu1 %v2728_v4 }
  0x23   : > { %678 = vmatpush1.bf16.msra.mxu0 %v2556_v34  ;;  %2424 = vmatpush3.bf16.msra.mxu1 %v2557_v35 }
  0x24   : > { %2429 = vmatprep.subr.bf16.mxu1 %v2728_v4  ;;  %2453 = vmatprep.subr.bf16.mxu0 %v2728_v4 }
  0x9e   : > { %v447_v7 = vpop.xlane.xlu0 %446 }
  0x9f   : > { %v451_v8 = vmul.f32 0.0078125, %v447_v7 }
  0xa1   : > { %v2838_v9 = vsub.f32 %v442_v0, %v451_v8 }
  0xa2   : > { %v449_v10 = vpop.xlane.xlu0 %448 }
  0xa3   : > { %v452_v11 = vmul.f32 0.0078125, %v449_v10  ;;  %v455_v12 = vmul.f32 %v2838_v9, %v2838_v9 }
  0xa5   : > { %v2842_v13 = vsub.f32 %v443_v1, %v452_v11  ;;  %457 = vadd.xlane.f32.xlu1 %v455_v12 }
  0xa7   : > { %v456_v14 = vmul.f32 %v2842_v13, %v2842_v13 }
  0xa9   : > { %459 = vadd.xlane.f32.xlu1 %v456_v14 }
 0x132   : > { %v458_v36 = vpop.xlane.xlu1 %457 }
 0x133   : > { %v461_v37 = vmul.f32 0.0078125, %v458_v36 }
 0x135   : > { %v463_v38 = vadd.f32 1e-05, %v461_v37 }
 0x136   : > { %v460_v39 = vpop.xlane.xlu1 %459 }
 0x137   : > { %2646 = vrsqrt.f32 %v463_v38  ;;  %v462_v40 = vmul.f32 0.0078125, %v460_v39 }
 0x139   : > { %v464_v41 = vadd.f32 1e-05, %v462_v40 }
 0x13b   : > { %2648 = vrsqrt.f32 %v464_v41 }
 0x141   : > { %v2647_v42 = vpop.eup %2646 }
 0x142   : > { %v467_v43 = vmul.f32 %v2647_v42, %v2838_v9 }
 0x144   : > { %v475_v47 = vmul.f32 %v2209_v44, %v467_v43 }
 0x145   : > { %v2649_v45 = vpop.eup %2648 }
 0x146   : > { %v468_v46 = vmul.f32 %v2649_v45, %v2842_v13  ;;  %v483_v50 = vadd.f32 %v2210_v48, %v475_v47 }
 0x148   : > { %v476_v49 = vmul.f32 %v2209_v44, %v468_v46 }
 0x14a   : > { %v484_v51 = vadd.f32 %v2210_v48, %v476_v49 }
 0x14c   : > { %v485_v52 = vpack.c.bf16 %v484_v51, %v483_v50 }
 0x14e   : > { %696 = vmatmul.mubr.bf16.vlgmr.msra.gmra.mrb[0].mxu0 %v485_v52  ;;  %2426 = vmatmul.mubr.bf16.vlgmr.msra.gmra.mrb[0].mxu1 %v485_v52 }
 0x14f   : > { %2431 = vmatprep.mubr.msk.bf16.mxu1 %vm2730_vm0, %v2728_v4  ;;  %2455 = vmatprep.mubr.msk.bf16.mxu0 %vm2730_vm0, %v2728_v4 }
 0x221   : > { %v697_v61 = vpop.f32.mrb[0].mxu0  ;;  %v740_v62 = vpop.f32.mrb[0].mxu1 }
 0x222   : > { %v699_v0 = vpop.f32.mrb[1].mxu0  ;;  %v2427_v1 = vpop.f32.mrb[1].mxu1  ;;  %v698_v5 = vadd.f32 %v697_v61, %v523_v59  ;;  %v741_v6 = vadd.f32 %v740_v62, %v531_v60 }
 0x223   : > { %v701_v2 = vpop.f32.mrb[2].mxu0  ;;  %v743_v3 = vpop.f32.mrb[2].mxu1  ;;  %v700_v11 = vadd.f32 %v699_v0, %v527_v63 }
 0x224   : > { %v702_v7 = vadd.f32 %v701_v2, %v523_v59  ;;  %v744_v8 = vadd.f32 %v743_v3, %v531_v60  ;;  %v703_v9 = vpop.f32.mrb[3].mxu0  ;;  %v2428_v10 = vpop.f32.mrb[3].mxu1 }
 0x225   : > { %v704_v12 = vadd.f32 %v703_v9, %v527_v63 }
 0x226   : > { %v747_v13 = vpack.c.bf16 %v702_v7, %v698_v5  ;;  %v2943_v14 = vpack.c.bf16 %v744_v8, %v741_v6 }
 0x227   : > { %v748_v15 = vpack.c.bf16 %v704_v12, %v700_v11 }
 0x229   : > { %v755_v16 = vsel %vm750_vm1, %v748_v15, 0 }
 0x22a   : > { %2430 = vmatpush3.bf16.xpose.msra.mxu1 %v755_v16 }
 0x22b   : > { %2435 = vmatprep.subr.bf16.mxu1 %v2728_v4 }
 0x231   : > { %2432 = vmatmul.mubr.msk.bf16.vlgmr.msra.gmra.mrb[4].mxu1 %vm750_vm1, %v747_v13 }
 0x232   : > { %2436 = vmatpush3.bf16.msra.mxu1 %v2943_v14  ;;  %2437 = vmatprep.mubr.msk.bf16.mxu1 %vm2730_vm0, %v2728_v4 }
 0x233   : > { %2441 = vmatprep.subr.bf16.mxu1 %v2728_v4 }
 0x304   : > { %v791_v17 = vpop.f32.mrb[4].mxu1 }
 0x305   : > { %v798_v18 = vmul.f32 0.17677669, %v791_v17  ;;  %v2433_v19 = vpop.f32.mrb[5].mxu1 }
 0x306   : > { %v794_v20 = vpop.f32.mrb[6].mxu1 }
 0x307   : > { %v799_v21 = vmul.f32 0.17677669, %v794_v20  ;;  %v2434_v22 = vpop.f32.mrb[7].mxu1  ;;  %v801_v23 = vsel %vm800_vm2, %v798_v18, -inf }
 0x308   : > { %802 = vmax.xlane.f32.xlu0 %v801_v23 }
 0x309   : > { %v804_v24 = vsel %vm800_vm2, %v799_v21, -inf }
 0x30a   : > { %805 = vmax.xlane.f32.xlu1 %v804_v24 }
 0x395   : > { %v803_v25 = vpop.xlane.xlu0 %802 }
 0x396   : > { %v807_v26 = vsub.f32 %v798_v18, %v803_v25 }
 0x397   : > { %v806_v27 = vpop.xlane.xlu1 %805 }
 0x398   : > { %v809_v28 = vmul.f32 1.442695, %v807_v26  ;;  %v808_v29 = vsub.f32 %v799_v21, %v806_v27 }
 0x39a   : > { %2650 = vpow2.f32 %v809_v28  ;;  %v811_v31 = vmul.f32 1.442695, %v808_v29 }
 0x39c   : > { %2652 = vpow2.f32 %v811_v31 }
 0x3a4   : > { %v2651_v32 = vpop.eup %2650 }
 0x3a5   : > { %v813_v33 = vsel %vm800_vm2, %v2651_v32, 0.0 }
 0x3a6   : > { %v2653_v34 = vpop.eup %2652  ;;  %814 = vadd.xlane.f32.xlu0 %v813_v33 }
 0x3a7   : > { %v816_v35 = vsel %vm800_vm2, %v2653_v34, 0.0 }
 0x3a8   : > { %817 = vadd.xlane.f32.xlu1 %v816_v35 }
 0x3b9   : > { %869 = vrot.lane.b32.xlu1 %v747_v13, %s2731_s16 }
 0x3bc   : > { %872 = vrot.lane.b32.xlu0 %v748_v15, %s2731_s16 }
 0x3bd   : > { %996 = vrot.lane.b32.xlu1 %v748_v15, %s2732_s17 }
 0x3c0   : > { %1119 = vrot.lane.b32.xlu0 %v748_v15, %s2733_s18 }
 0x3c1   : > { %994 = vrot.lane.b32.xlu1 %v747_v13, %s2732_s17 }
 0x3c5   : > { %1117 = vrot.lane.b32.xlu1 %v747_v13, %s2733_s18 }
 0x433   : > { %v815_v36 = vpop.xlane.xlu0 %814 }
 0x434   : > { %2654 = vrcp.f32 %v815_v36 }
 0x435   : > { %v818_v37 = vpop.xlane.xlu1 %817 }
 0x436   : > { %2656 = vrcp.f32 %v818_v37 }
 0x437   : > { %v873_v39 = vpop.permute.xlu0 %872 }
 0x438   : > { %v878_v48 = vsel %vm750_vm1, %v873_v39, 0 }
 0x439   : > { %v870_v38 = vpop.permute.xlu1 %869 }
 0x43b   : > { %v1120_v46 = vpop.permute.xlu0 %1119 }
 0x43c   : > { %v1125_v50 = vsel %vm750_vm1, %v1120_v46, 0 }
 0x43d   : > { %v997_v40 = vpop.permute.xlu1 %996 }
 0x43e   : > { %v2655_v41 = vpop.eup %2654  ;;  %v1002_v42 = vsel %vm750_vm1, %v997_v40, 0 }
 0x43f   : > { %2454 = vmatpush3.bf16.xpose.msra.mxu0 %v1002_v42  ;;  %v821_v44 = vmul.f32 %v2655_v41, %v2651_v32 }
 0x440   : > { %v2657_v43 = vpop.eup %2656  ;;  %2465 = vmatprep.subr.bf16.mxu0 %v2728_v4 }
 0x441   : > { %v822_v45 = vmul.f32 %v2657_v43, %v2653_v34  ;;  %v995_v49 = vpop.permute.xlu1 %994 }
 0x443   : > { %v823_v47 = vpack.c.bf16 %v822_v45, %v821_v44 }
 0x445   : > { %2438 = vmatmul.mubr.msk.bf16.vlgmr.msra.gmra.mrb[8].mxu1 %vm800_vm2, %v823_v47  ;;  %v1118_v51 = vpop.permute.xlu1 %1117 }
 0x446   : > { %2442 = vmatpush3.bf16.xpose.msra.mxu1 %v878_v48  ;;  %2456 = vmatmul.mubr.msk.bf16.vlgmr.msra.gmra.mrb[4].mxu0 %vm750_vm1, %v995_v49 }
 0x447   : > { %2466 = vmatpush3.bf16.xpose.msra.mxu0 %v1125_v50  ;;  %2443 = vmatprep.mubr.msk.bf16.mxu1 %vm2730_vm0, %v2728_v4 }
 0x448   : > { %2467 = vmatprep.mubr.msk.bf16.mxu0 %vm2730_vm0, %v2728_v4  ;;  %2447 = vmatprep.subr.bf16.mxu1 %v2728_v4 }
 0x449   : > { %2477 = vmatprep.subr.bf16.mxu0 %v2728_v4 }
 0x44d   : > { %2444 = vmatmul.mubr.msk.bf16.vlgmr.msra.gmra.mrb[12].mxu1 %vm750_vm1, %v870_v38 }
 0x44e   : > { %2468 = vmatmul.mubr.msk.bf16.vlgmr.msra.gmra.mrb[8].mxu0 %vm750_vm1, %v1118_v51  ;;  %2449 = vmatprep.mubr.msk.bf16.mxu1 %vm2730_vm0, %v2728_v4 }
 0x44f   : > { %2493 = vmatprep.mubr.msk.bf16.mxu0 %vm2730_vm0, %v2728_v4 }
 0x518   : > { %v2980_v52 = vpop.f32.mrb[8].mxu1 }
 0x519   : > { %v2439_v53 = vpop.f32.mrb[9].mxu1  ;;  %v1038_v57 = vpop.f32.mrb[4].mxu0 }
 0x51a   : > { %v2982_v59 = vpop.f32.mrb[10].mxu1  ;;  %v2457_v60 = vpop.f32.mrb[5].mxu0  ;;  %v1045_v5 = vmul.f32 0.17677669, %v1038_v57 }
 0x51b   : > { %v2440_v61 = vpop.f32.mrb[11].mxu1  ;;  %v1041_v62 = vpop.f32.mrb[6].mxu0 }
 0x51c   : > { %v2458_v63 = vpop.f32.mrb[7].mxu0  ;;  %v1046_v16 = vmul.f32 0.17677669, %v1041_v62  ;;  %v1047_v17 = vsel %vm800_vm2, %v1045_v5, -inf }
 0x51e   : > { %v1050_v20 = vsel %vm800_vm2, %v1046_v16, -inf }
 0x520   : > { %v914_v0 = vpop.f32.mrb[12].mxu1 }
 0x521   : > { %v921_v1 = vmul.f32 0.17677669, %v914_v0  ;;  %v2445_v2 = vpop.f32.mrb[13].mxu1  ;;  %v1161_v3 = vpop.f32.mrb[8].mxu0 }
 0x522   : > { %v917_v6 = vpop.f32.mrb[14].mxu1  ;;  %v2469_v7 = vpop.f32.mrb[9].mxu0  ;;  %v1168_v19 = vmul.f32 0.17677669, %v1161_v3 }
 0x523   : > { %v922_v8 = vmul.f32 0.17677669, %v917_v6  ;;  %v2446_v9 = vpop.f32.mrb[15].mxu1  ;;  %v1164_v10 = vpop.f32.mrb[10].mxu0  ;;  %v923_v11 = vsel %vm800_vm2, %v921_v1, -inf }
 0x524   : > { %v2470_v12 = vpop.f32.mrb[11].mxu0  ;;  %924 = vmax.xlane.f32.xlu0 %v923_v11  ;;  %v1169_v13 = vmul.f32 0.17677669, %v1164_v10  ;;  %v1170_v21 = vsel %vm800_vm2, %v1168_v19, -inf }
 0x525   : > { %v926_v15 = vsel %vm800_vm2, %v922_v8, -inf }
 0x526   : > { %927 = vmax.xlane.f32.xlu1 %v926_v15  ;;  %v1173_v18 = vsel %vm800_vm2, %v1169_v13, -inf }
 0x528   : > { %1048 = vmax.xlane.f32.xlu0 %v1047_v17 }
 0x52a   : > { %1174 = vmax.xlane.f32.xlu1 %v1173_v18 }
 0x52c   : > { %1051 = vmax.xlane.f32.xlu0 %v1050_v20  ;;  %v2558_v20 = vld [vmem:[%s3316_s5] sm:$0xff]  }
 0x52d   : > { %2478 = vmatpush3.bf16.msra.mxu0 %v2558_v20 }
 0x52e   : > { %2479 = vmatprep.subr.bf16.mxu0 %v2728_v4 }
 0x530   : > { %1171 = vmax.xlane.f32.xlu0 %v1170_v21  ;;  %v2559_v21 = vld [vmem:[%s3316_s5 + $0x8] sm:$0xff]  }
 0x531   : > { %2480 = vmatpush3.bf16.msra.mxu0 %v2559_v21 }
 0x532   : > { %2481 = vmatprep.subr.bf16.mxu0 %v2728_v4 }
 0x5b1   : > { %v925_v22 = vpop.xlane.xlu0 %924 }
 0x5b2   : > { %v929_v32 = vsub.f32 %v921_v1, %v925_v22  ;;  %v2560_v22 = vld [vmem:[%s3316_s5 + $0x10] sm:$0xff]  }
 0x5b3   : > { %v928_v23 = vpop.xlane.xlu1 %927  ;;  %2482 = vmatpush3.bf16.msra.mxu0 %v2560_v22 }
 0x5b4   : > { %v930_v33 = vsub.f32 %v922_v8, %v928_v23  ;;  %v931_v38 = vmul.f32 1.442695, %v929_v32  ;;  %2483 = vmatprep.subr.bf16.mxu0 %v2728_v4  ;;  %v2561_v23 = vld [vmem:[%s3316_s5 + $0x18] sm:$0xff]   ;;  %v2564_v32 = vld [vmem:[%s3316_s5 + $0x30] sm:$0xff]  }
 0x5b5   : > { %v1049_v24 = vpop.xlane.xlu0 %1048 }
 0x5b6   : > { %v1053_v25 = vsub.f32 %v1045_v5, %v1049_v24  ;;  %v933_v39 = vmul.f32 1.442695, %v930_v33  ;;  %v2562_v24 = vld [vmem:[%s3316_s5 + $0x20] sm:$0xff]  }
 0x5b7   : > { %v1175_v26 = vpop.xlane.xlu1 %1174  ;;  %2484 = vmatpush3.bf16.msra.mxu0 %v2561_v23 }
 0x5b8   : > { %v1055_v27 = vmul.f32 1.442695, %v1053_v25  ;;  %v1177_v28 = vsub.f32 %v1169_v13, %v1175_v26  ;;  %2485 = vmatprep.subr.bf16.mxu0 %v2728_v4 }
 0x5b9   : > { %v1052_v29 = vpop.xlane.xlu0 %1051 }
 0x5ba   : > { %2658 = vpow2.f32 %v1055_v27  ;;  %v1054_v31 = vsub.f32 %v1046_v16, %v1052_v29  ;;  %v1180_v34 = vmul.f32 1.442695, %v1177_v28  ;;  %v2563_v27 = vld [vmem:[%s3316_s5 + $0x28] sm:$0xff]  }
 0x5bb   : > { %2486 = vmatpush3.bf16.msra.mxu0 %v2562_v24 }
 0x5bc   : > { %v1057_v35 = vmul.f32 1.442695, %v1054_v31  ;;  %2487 = vmatprep.subr.bf16.mxu0 %v2728_v4 }
 0x5bd   : > { %v1172_v36 = vpop.xlane.xlu0 %1171 }
 0x5be   : > { %2660 = vpow2.f32 %v1057_v35  ;;  %v1176_v37 = vsub.f32 %v1168_v19, %v1172_v36  ;;  %v2565_v35 = vld [vmem:[%s3316_s5 + $0x38] sm:$0xff]  }
 0x5bf   : > { %2662 = vpow2.f32 %v1180_v34  ;;  %2488 = vmatpush3.bf16.msra.mxu0 %v2563_v27  ;;  %v2583_v27 = vld [vmem:[%s3320_s9 + $0x4c] ss:$16 sps:$4 sm:$0xff]  }
 0x5c0   : > { %v1178_v40 = vmul.f32 1.442695, %v1176_v37  ;;  %2489 = vmatprep.subr.bf16.mxu0 %v2728_v4 }
 0x5c2   : > { %2664 = vpow2.f32 %v1178_v40 }
 0x5c3   : > { %2666 = vpow2.f32 %v931_v38  ;;  %2490 = vmatpush3.bf16.msra.mxu0 %v2564_v32  ;;  %v2589_v32 = vld [vmem:[%s3320_s9 + $0x6c] ss:$16 sps:$4 sm:$0xff]  }
 0x5c4   : > { %v2659_v41 = vpop.eup %2658  ;;  %2668 = vpow2.f32 %v933_v39  ;;  %2491 = vmatprep.subr.bf16.mxu0 %v2728_v4 }
 0x5c5   : > { %v1059_v42 = vsel %vm800_vm2, %v2659_v41, 0.0 }
 0x5c6   : > { %1060 = vadd.xlane.f32.xlu0 %v1059_v42 }
 0x5c7   : > { %2492 = vmatpush3.bf16.msra.mxu0 %v2565_v35  ;;  %v2592_v35 = vld [vmem:[%s3320_s9 + $0x84] ss:$16 sps:$4 sm:$0xff]  }
 0x5c8   : > { %v2661_v43 = vpop.eup %2660 }
 0x5c9   : > { %v1062_v44 = vsel %vm800_vm2, %v2661_v43, 0.0  ;;  %v2663_v45 = vpop.eup %2662 }
 0x5ca   : > { %1063 = vadd.xlane.f32.xlu1 %v1062_v44  ;;  %v1185_v49 = vsel %vm800_vm2, %v2663_v45, 0.0 }
 0x5cc   : > { %v2665_v46 = vpop.eup %2664 }
 0x5cd   : > { %v2667_v47 = vpop.eup %2666  ;;  %v1182_v48 = vsel %vm800_vm2, %v2665_v46, 0.0 }
 0x5ce   : > { %v2669_v50 = vpop.eup %2668  ;;  %1183 = vadd.xlane.f32.xlu0 %v1182_v48  ;;  %1186 = vadd.xlane.f32.xlu1 %v1185_v49  ;;  %v935_v51 = vsel %vm800_vm2, %v2667_v47, 0.0 }
 0x5cf   : > { %v938_v53 = vsel %vm800_vm2, %v2669_v50, 0.0 }
 0x5d2   : > { %936 = vadd.xlane.f32.xlu0 %v935_v51  ;;  %939 = vadd.xlane.f32.xlu1 %v938_v53 }
 0x5e3   : > { %1070 = vrot.lane.b32.xlu1 %v2943_v14, %s2732_s17 }
 0x5e7   : > { %1193 = vrot.lane.b32.xlu1 %v2943_v14, %s2733_s18 }
 0x5e8   : > { %947 = vrot.lane.b32.xlu0 %v2943_v14, %s2731_s16 }
 0x653   : > { %v1061_v57 = vpop.xlane.xlu0 %1060 }
 0x657   : > { %v1064_v60 = vpop.xlane.xlu1 %1063 }
 0x65b   : > { %v1184_v61 = vpop.xlane.xlu0 %1183  ;;  %v1187_v62 = vpop.xlane.xlu1 %1186 }
 0x65f   : > { %v937_v63 = vpop.xlane.xlu0 %936  ;;  %v940_v0 = vpop.xlane.xlu1 %939 }
 0x660   : > { %2670 = vrcp.f32 %v937_v63 }
 0x661   : > { %2672 = vrcp.f32 %v940_v0 }
 0x662   : > { %2674 = vrcp.f32 %v1064_v60 }
 0x663   : > { %v948_v1 = vpop.permute.xlu0 %947  ;;  %2676 = vrcp.f32 %v1061_v57  ;;  %v1071_v8 = vpop.permute.xlu1 %1070 }
 0x664   : > { %2448 = vmatpush3.bf16.msra.mxu1 %v948_v1  ;;  %2678 = vrcp.f32 %v1184_v61  ;;  %v2243_v1 = vld [vmem:[%s3317_s6] ss:$0 sm:$0xff] }
 0x665   : > { %2459 = vmatprep.subr.bf16.mxu1 %v2728_v4  ;;  %2680 = vrcp.f32 %v1187_v62 }
 0x667   : > { %v1194_v16 = vpop.permute.xlu1 %1193 }
 0x66a   : > { %v2671_v2 = vpop.eup %2670 }
 0x66b   : > { %v2673_v3 = vpop.eup %2672  ;;  %v943_v5 = vmul.f32 %v2671_v2, %v2667_v47 }
 0x66c   : > { %v944_v6 = vmul.f32 %v2673_v3, %v2669_v50  ;;  %v2675_v7 = vpop.eup %2674 }
 0x66d   : > { %v2677_v9 = vpop.eup %2676  ;;  %v1068_v10 = vmul.f32 %v2675_v7, %v2661_v43 }
 0x66e   : > { %v945_v14 = vpack.c.bf16 %v944_v6, %v943_v5  ;;  %v1067_v11 = vmul.f32 %v2677_v9, %v2659_v41  ;;  %v2679_v12 = vpop.eup %2678 }
 0x66f   : > { %v2681_v15 = vpop.eup %2680  ;;  %v1190_v17 = vmul.f32 %v2679_v12, %v2665_v46  ;;  %v2571_v12 = vld [vmem:[%s3320_s9 + $0xc] ss:$16 sps:$4 sm:$0xff]  }
 0x670   : > { %2450 = vmatmul.mubr.msk.bf16.vlgmr.msra.gmra.mrb[16].mxu1 %vm800_vm2, %v945_v14  ;;  %v1069_v13 = vpack.c.bf16 %v1068_v10, %v1067_v11  ;;  %v1191_v18 = vmul.f32 %v2681_v15, %v2663_v45  ;;  %v2568_v10 = vld [vmem:[%s3320_s9 + $0x4] ss:$16 sps:$4 sm:$0xff]   ;;  %v2569_v11 = vld [vmem:[%s3320_s9 + $0x8] ss:$16 sps:$4 sm:$0xff]   ;;  %v2577_v15 = vld [vmem:[%s3320_s9 + $0x2c] ss:$16 sps:$4 sm:$0xff]   ;;  %1685 = vmatprep.subr.bf16.mxu0 %v2571_v12 }
 0x671   : > { %2460 = vmatpush3.bf16.msra.mxu1 %v1071_v8  ;;  %2461 = vmatprep.mubr.msk.bf16.mxu1 %vm2730_vm0, %v2728_v4  ;;  %v2719_v8 = vld [vmem:[%s2820_s30 + $0x8] sm:$0xff] }
 0x672   : > { %2471 = vmatprep.subr.bf16.mxu1 %v2728_v4  ;;  %v1192_v19 = vpack.c.bf16 %v1191_v18, %v1190_v17  ;;  %v2575_v17 = vld [vmem:[%s3320_s9 + $0x28] ss:$16 sps:$4 sm:$0xff]  }
 0x673   : > { %v2618_v12 = vld [vmem:[%s3322_s11 + $0x48] sm:$0xff]  }
 0x678   : > { %2462 = vmatmul.mubr.msk.bf16.vlgmr.msra.gmra.mrb[20].mxu1 %vm800_vm2, %v1069_v13  ;;  %v2574_v13 = vld [vmem:[%s3320_s9 + $0x24] ss:$16 sps:$4 sm:$0xff]  }
 0x679   : > { %2472 = vmatpush3.bf16.msra.mxu1 %v1194_v16  ;;  %2473 = vmatprep.mubr.msk.bf16.mxu1 %vm2730_vm0, %v2728_v4  ;;  %v2572_v16 = vld [vmem:[%s3320_s9 + $0x20] ss:$16 sps:$4 sm:$0xff]  }
 0x67a   : > { %1642 = vmatprep.subr.bf16.mxu1 %v2568_v10  ;;  %v2616_v10 = vld [vmem:[%s3322_s11] sm:$0xff]  }
 0x680   : > { %2474 = vmatmul.mubr.msk.bf16.vlgmr.msra.gmra.mrb[24].mxu1 %vm800_vm2, %v1192_v19 }
 0x681   : > { %1674 = vmatprep.mubr.bf16.mxu1 %v2729_v30 }
 0x743   : > { %v987_v25 = vpop.f32.mrb[16].mxu1 }
 0x744   : > { %v2451_v26 = vpop.f32.mrb[17].mxu1 }
 0x745   : > { %v990_v28 = vpop.f32.mrb[18].mxu1  ;;  %v2580_v26 = vld [vmem:[%s3320_s9 + $0x44] ss:$16 sps:$4 sm:$0xff]  }
 0x746   : > { %v2511_v29 = vpack.i.bf16 %v990_v28, %v987_v25  ;;  %v2452_v31 = vpop.f32.mrb[19].mxu1  ;;  %v2578_v28 = vld [vmem:[%s3320_s9 + $0x40] ss:$16 sps:$4 sm:$0xff]  }
 0x747   : > { %v2586_v31 = vld [vmem:[%s3320_s9 + $0x64] ss:$16 sps:$4 sm:$0xff]  }
 0x748   : > { %2512 = vrot.lane.b32.xlu1 %v2511_v29, %s2733_s18  ;;  %v2581_v29 = vld [vmem:[%s3320_s9 + $0x48] ss:$16 sps:$4 sm:$0xff]  }
 0x74b   : > { %v1110_v33 = vpop.f32.mrb[20].mxu1 }
 0x74c   : > { %v2463_v34 = vpop.f32.mrb[21].mxu1 }
 0x74d   : > { %v1113_v36 = vpop.f32.mrb[22].mxu1  ;;  %v2587_v34 = vld [vmem:[%s3320_s9 + $0x68] ss:$16 sps:$4 sm:$0xff]  }
 0x74e   : > { %v2516_v37 = vpack.i.bf16 %v1113_v36, %v1110_v33  ;;  %v2464_v38 = vpop.f32.mrb[23].mxu1  ;;  %v2584_v33 = vld [vmem:[%s3320_s9 + $0x60] ss:$16 sps:$4 sm:$0xff]   ;;  %v2595_v36 = vld [vmem:[%s3320_s9 + $0x8c] ss:$16 sps:$4 sm:$0xff]  }
 0x74f   : > { %v2593_v38 = vld [vmem:[%s3320_s9 + $0x88] ss:$16 sps:$4 sm:$0xff]  }
 0x750   : > { %2517 = vrot.lane.b32.xlu0 %v2516_v37, %s2732_s17  ;;  %v2590_v37 = vld [vmem:[%s3320_s9 + $0x80] ss:$16 sps:$4 sm:$0xff]  }
 0x753   : > { %v1233_v39 = vpop.f32.mrb[24].mxu1 }
 0x754   : > { %v2475_v40 = vpop.f32.mrb[25].mxu1 }
 0x755   : > { %v1236_v41 = vpop.f32.mrb[26].mxu1  ;;  %v2601_v40 = vld [vmem:[%s3320_s9 + $0xac] ss:$16 sps:$4 sm:$0xff]  }
 0x756   : > { %v2521_v42 = vpack.i.bf16 %v1236_v41, %v1233_v39  ;;  %v2476_v43 = vpop.f32.mrb[27].mxu1  ;;  %v2598_v39 = vld [vmem:[%s3320_s9 + $0xa4] ss:$16 sps:$4 sm:$0xff]   ;;  %v2596_v41 = vld [vmem:[%s3320_s9 + $0xa0] ss:$16 sps:$4 sm:$0xff]  }
 0x757   : > { %v2604_v43 = vld [vmem:[%s3320_s9 + $0xc4] ss:$16 sps:$4 sm:$0xff]  }
 0x758   : > { %2522 = vrot.lane.b32.xlu1 %v2521_v42, %s2731_s16  ;;  %v2599_v42 = vld [vmem:[%s3320_s9 + $0xa8] ss:$16 sps:$4 sm:$0xff]   ;;  %s440_s16 = scalar_lea.vmem %s3324_s13, %s2329_s27 }
 0x7ba   : > { %v2513_v44 = vpop.permute.xlu1 %2512 }
 0x7bb   : > { %v2515_v45 = vunpack.i.h.bf16 %v2513_v44  ;;  %v2514_v46 = vunpack.i.l.bf16 %v2513_v44  ;;  %v2607_v44 = vld [vmem:[%s3320_s9 + $0xcc] ss:$16 sps:$4 sm:$0xff]  }
 0x7bd   : > { %v1265_v50 = vsel %vm750_vm1, %v2982_v59, %v2515_v45  ;;  %v1264_v51 = vsel %vm750_vm1, %v2980_v52, %v2514_v46  ;;  %v2718_v52 = vld [vmem:[%s2820_s30] sm:$0xff]  ;;  %v2605_v45 = vld [vmem:[%s3320_s9 + $0xc8] ss:$16 sps:$4 sm:$0xff]  }
 0x7be   : > { %v2610_v46 = vld [vmem:[%s3320_s9 + $0xe4] ss:$16 sps:$4 sm:$0xff]  }
 0x7c2   : > { %v2518_v4 = vpop.permute.xlu0 %2517 }
 0x7c3   : > { %v2520_v47 = vunpack.i.h.bf16 %v2518_v4  ;;  %v2519_v48 = vunpack.i.l.bf16 %v2518_v4  ;;  %v2602_v4 = vld [vmem:[%s3320_s9 + $0xc0] ss:$16 sps:$4 sm:$0xff]  }
 0x7c5   : > { %v1268_v60 = vsel %vm1266_vm3, %v1265_v50, %v2520_v47  ;;  %v1267_v61 = vsel %vm1266_vm3, %v1264_v51, %v2519_v48  ;;  %v2613_v47 = vld [vmem:[%s3320_s9 + $0xec] ss:$16 sps:$4 sm:$0xff]   ;;  %v2608_v48 = vld [vmem:[%s3320_s9 + $0xe0] ss:$16 sps:$4 sm:$0xff]  }
 0x7ca   : > { %v2523_v49 = vpop.permute.xlu1 %2522 }
 0x7cb   : > { %v2525_v53 = vunpack.i.h.bf16 %v2523_v49  ;;  %v2524_v57 = vunpack.i.l.bf16 %v2523_v49  ;;  %v2611_v49 = vld [vmem:[%s3320_s9 + $0xe8] ss:$16 sps:$4 sm:$0xff]  }
 0x7cd   : > { %v1271_v62 = vsel %vm1269_vm4, %v1268_v60, %v2525_v53  ;;  %v1270_v63 = vsel %vm1269_vm4, %v1267_v61, %v2524_v57 }
 0x7ce   : > { %v1272_v0 = vpack.c.bf16 %v1271_v62, %v1270_v63 }
 0x7d0   : > { %2494 = vmatmul.mubr.bf16.vlgmr.msra.gmra.mrb[12].mxu0 %v1272_v0  ;;  %v2252_v0 = vld [vmem:[%s3318_s7] ss:$0 sm:$0xff] }
 0x7d1   : > { %1717 = vmatprep.mubr.bf16.mxu0 %v2729_v30  ;;  %v2566_v30 = vld [vmem:[%s3320_s9] ss:$16 sps:$4 sm:$0xff]   ;;  %1686 = vmatpush1.bf16.msra.mxu0 %v2569_v11 }
 0x7d2   : > { %1643 = vmatpush1.bf16.msra.mxu1 %v2566_v30  ;;  %1687 = vmatprep.subr.bf16.mxu0 %v2577_v15  ;;  %v2615_v30 = vld [vmem:[%s3322_s11 + $0xc0] sm:$0xff]   ;;  %v2620_v15 = vld [vmem:[%s3322_s11 + $0x8] sm:$0xff]  }
 0x7d3   : > { %1644 = vmatprep.subr.bf16.mxu1 %v2574_v13  ;;  %v2617_v11 = vld [vmem:[%s3322_s11 + $0x80] sm:$0xff]   ;;  %v2619_v13 = vld [vmem:[%s3322_s11 + $0xc8] sm:$0xff]  }
 0x7d5   : > { %1688 = vmatpush1.bf16.msra.mxu0 %v2575_v17  ;;  %v2622_v17 = vld [vmem:[%s3322_s11 + $0x50] sm:$0xff]  }
 0x7d6   : > { %1645 = vmatpush1.bf16.msra.mxu1 %v2572_v16  ;;  %1689 = vmatprep.subr.bf16.mxu0 %v2583_v27  ;;  %v2621_v16 = vld [vmem:[%s3322_s11 + $0x88] sm:$0xff]   ;;  %v2632_v27 = vld [vmem:[%s3322_s11 + $0x20] sm:$0xff]  }
 0x7d7   : > { %1646 = vmatprep.subr.bf16.mxu1 %v2580_v26  ;;  %v2631_v26 = vld [vmem:[%s3322_s11 + $0xe0] sm:$0xff]  }
 0x7d9   : > { %1690 = vmatpush1.bf16.msra.mxu0 %v2581_v29  ;;  %v2634_v29 = vld [vmem:[%s3322_s11 + $0x68] sm:$0xff]  }
 0x7da   : > { %1647 = vmatpush1.bf16.msra.mxu1 %v2578_v28  ;;  %1691 = vmatprep.subr.bf16.mxu0 %v2589_v32  ;;  %v2633_v28 = vld [vmem:[%s3322_s11 + $0xa0] sm:$0xff]   ;;  %v2636_v32 = vld [vmem:[%s3322_s11 + $0x28] sm:$0xff]  }
 0x7db   : > { %1648 = vmatprep.subr.bf16.mxu1 %v2586_v31  ;;  %v2635_v31 = vld [vmem:[%s3322_s11 + $0xe8] sm:$0xff]  }
 0x7dd   : > { %1692 = vmatpush1.bf16.msra.mxu0 %v2587_v34  ;;  %v2638_v34 = vld [vmem:[%s3322_s11 + $0x70] sm:$0xff]  }
 0x7de   : > { %1649 = vmatpush1.bf16.msra.mxu1 %v2584_v33  ;;  %1693 = vmatprep.subr.bf16.mxu0 %v2595_v36  ;;  %v2637_v33 = vld [vmem:[%s3322_s11 + $0xa8] sm:$0xff]   ;;  %v2640_v36 = vld [vmem:[%s3322_s11 + $0x30] sm:$0xff]  }
 0x7df   : > { %1650 = vmatprep.subr.bf16.mxu1 %v2592_v35  ;;  %v2639_v35 = vld [vmem:[%s3322_s11 + $0xf0] sm:$0xff]  }
 0x7e1   : > { %1694 = vmatpush1.bf16.msra.mxu0 %v2593_v38  ;;  %v2642_v38 = vld [vmem:[%s3322_s11 + $0x78] sm:$0xff]  }
 0x7e2   : > { %1651 = vmatpush1.bf16.msra.mxu1 %v2590_v37  ;;  %1695 = vmatprep.subr.bf16.mxu0 %v2601_v40  ;;  %v2641_v37 = vld [vmem:[%s3322_s11 + $0xb0] sm:$0xff]   ;;  %v2644_v40 = vld [vmem:[%s3322_s11 + $0x38] sm:$0xff]  }
 0x7e3   : > { %1652 = vmatprep.subr.bf16.mxu1 %v2598_v39  ;;  %v2643_v39 = vld [vmem:[%s3322_s11 + $0xf8] sm:$0xff]  }
 0x7e5   : > { %1696 = vmatpush1.bf16.msra.mxu0 %v2599_v42  ;;  %v1460_v42 = vld [vmem:[%s3321_s10] sm:$0xf] }
 0x7e6   : > { %1653 = vmatpush1.bf16.msra.mxu1 %v2596_v41  ;;  %1697 = vmatprep.subr.bf16.mxu0 %v2607_v44  ;;  %v2645_v41 = vld [vmem:[%s3322_s11 + $0xb8] sm:$0xff]   ;;  %v1465_v44 = vrot.slane %v1460_v42, %v522_v55 }
 0x7e7   : > { %1654 = vmatprep.subr.bf16.mxu1 %v2604_v43  ;;  %v1476_v43 = vsub.s32 3, %v2929_v54 }
 0x7e9   : > { %1698 = vmatpush1.bf16.msra.mxu0 %v2605_v45  ;;  %v1469_v45 = vrot.slane %v1460_v42, %v526_v58 }
 0x7ea   : > { %1655 = vmatpush1.bf16.msra.mxu1 %v2602_v4  ;;  %1699 = vmatprep.subr.bf16.mxu0 %v2613_v47  ;;  %v1473_v4 = vrot.slane %v1460_v42, %v530_v56 }
 0x7eb   : > { %1656 = vmatprep.subr.bf16.mxu1 %v2610_v46  ;;  %v1477_v46 = vrot.slane %v1460_v42, %v1476_v43 }
 0x7ed   : > { %1700 = vmatpush1.bf16.msra.mxu0 %v2611_v49 }
 0x7ee   : > { %1657 = vmatpush1.bf16.msra.mxu1 %v2608_v48  ;;  %2387 = vmatprep.subr.bf16.mxu0 %v2615_v30 }
 0x8a3   : > { %v1378_v59 = vpop.f32.mrb[12].mxu0 }
 0x8a4   : > { %v1379_v2 = vadd.f32 %v2243_v1, %v1378_v59  ;;  %v2495_v3 = vpop.f32.mrb[13].mxu0 }
 0x8a5   : > { %v1381_v5 = vpop.f32.mrb[14].mxu0  ;;  %v2253_v3 = vld [vmem:[%s3319_s8] ss:$0 sm:$0xff] }
 0x8a6   : > { %v3055_v6 = vadd.f32 %v2718_v52, %v1379_v2  ;;  %v1382_v14 = vadd.f32 %v2243_v1, %v1381_v5  ;;  %v2496_v7 = vpop.f32.mrb[15].mxu0 }
 0x8a8   : > { %v3058_v9 = vadd.f32 %v2719_v8, %v1382_v14  ;;  %1389 = vadd.xlane.f32.xlu0 %v3055_v6  ;;  %v2614_v8 = vld [vmem:[%s3322_s11 + $0x40] sm:$0xff]  }
 0x8a9   : > { %2365 = vmatprep.subr.bf16.mxu1 %v2614_v8 }
 0x8aa   : > { %1391 = vadd.xlane.f32.xlu1 %v3058_v9 }
 0x935   : > { %v1390_v18 = vpop.xlane.xlu0 %1389 }
 0x936   : > { %v1393_v19 = vmul.f32 0.0078125, %v1390_v18  ;;  %v2623_v18 = vld [vmem:[%s3322_s11 + $0xd0] sm:$0xff]  }
 0x937   : > { %v1392_v20 = vpop.xlane.xlu1 %1391 }
 0x938   : > { %v3087_v21 = vsub.f32 %v3055_v6, %v1393_v19  ;;  %v1394_v22 = vmul.f32 0.0078125, %v1392_v20  ;;  %v2624_v19 = vld [vmem:[%s3322_s11 + $0x10] sm:$0xff]  }
 0x939   : > { %v2625_v20 = vld [vmem:[%s3322_s11 + $0x90] sm:$0xff]  }
 0x93a   : > { %v3090_v23 = vsub.f32 %v3058_v9, %v1394_v22  ;;  %v1397_v24 = vmul.f32 %v3087_v21, %v3087_v21  ;;  %v2627_v22 = vld [vmem:[%s3322_s11 + $0xd8] sm:$0xff]  }
 0x93c   : > { %1399 = vadd.xlane.f32.xlu0 %v1397_v24  ;;  %v1398_v25 = vmul.f32 %v3090_v23, %v3090_v23  ;;  %v2629_v24 = vld [vmem:[%s3322_s11 + $0x98] sm:$0xff]  }
 0x940   : > { %1401 = vadd.xlane.f32.xlu0 %v1398_v25  ;;  %v2630_v25 = vld [vmem:[%s3322_s11 + $0x60] sm:$0xff]  }
 0x9c9   : > { %v1400_v50 = vpop.xlane.xlu0 %1399 }
 0x9ca   : > { %v1403_v51 = vmul.f32 0.0078125, %v1400_v50 }
 0x9cc   : > { %v1405_v53 = vadd.f32 1e-05, %v1403_v51 }
 0x9cd   : > { %v1402_v57 = vpop.xlane.xlu0 %1401 }
 0x9ce   : > { %2682 = vrsqrt.f32 %v1405_v53  ;;  %v1404_v60 = vmul.f32 0.0078125, %v1402_v57 }
 0x9d0   : > { %v1406_v61 = vadd.f32 1e-05, %v1404_v60 }
 0x9d2   : > { %2684 = vrsqrt.f32 %v1406_v61 }
 0x9d8   : > { %v2683_v62 = vpop.eup %2682 }
 0x9d9   : > { %v1409_v63 = vmul.f32 %v2683_v62, %v3087_v21  ;;  %v2626_v21 = vld [vmem:[%s3322_s11 + $0x58] sm:$0xff]  }
 0x9db   : > { %v1417_v2 = vmul.f32 %v2252_v0, %v1409_v63 }
 0x9dc   : > { %v2685_v1 = vpop.eup %2684 }
 0x9dd   : > { %v1410_v59 = vmul.f32 %v2685_v1, %v3090_v23  ;;  %v1425_v52 = vadd.f32 %v2253_v3, %v1417_v2  ;;  %v2628_v23 = vld [vmem:[%s3322_s11 + $0x18] sm:$0xff]  }
 0x9df   : > { %v1418_v5 = vmul.f32 %v2252_v0, %v1410_v59 }
 0x9e1   : > { %v1426_v14 = vadd.f32 %v2253_v3, %v1418_v5 }
 0x9e3   : > { %v1427_v7 = vpack.c.bf16 %v1426_v14, %v1425_v52 }
 0x9e5   : > { %1675 = vmatmul.mubr.bf16.vlgmr.msra.gmra.mrb[28].mxu1 %v1427_v7  ;;  %1718 = vmatmul.mubr.bf16.vlgmr.msra.gmra.mrb[16].mxu0 %v1427_v7 }
 0x9e6   : > { %2366 = vmatpush3.bf16.msra.mxu1 %v2616_v10  ;;  %2388 = vmatpush3.bf16.msra.mxu0 %v2617_v11 }
 0x9e7   : > { %2367 = vmatprep.subr.bf16.mxu1 %v2618_v12  ;;  %2389 = vmatprep.subr.bf16.mxu0 %v2619_v13 }
 0x9ea   : > { %2368 = vmatpush3.bf16.msra.mxu1 %v2620_v15  ;;  %2390 = vmatpush3.bf16.msra.mxu0 %v2621_v16 }
 0x9eb   : > { %2369 = vmatprep.subr.bf16.mxu1 %v2622_v17  ;;  %2391 = vmatprep.subr.bf16.mxu0 %v2623_v18 }
 0x9ee   : > { %2370 = vmatpush3.bf16.msra.mxu1 %v2624_v19  ;;  %2392 = vmatpush3.bf16.msra.mxu0 %v2625_v20 }
 0x9ef   : > { %2371 = vmatprep.subr.bf16.mxu1 %v2626_v21  ;;  %2393 = vmatprep.subr.bf16.mxu0 %v2627_v22 }
 0x9f2   : > { %2372 = vmatpush3.bf16.msra.mxu1 %v2628_v23  ;;  %2394 = vmatpush3.bf16.msra.mxu0 %v2629_v24 }
 0x9f3   : > { %2373 = vmatprep.subr.bf16.mxu1 %v2630_v25  ;;  %2395 = vmatprep.subr.bf16.mxu0 %v2631_v26 }
 0x9f6   : > { %2374 = vmatpush3.bf16.msra.mxu1 %v2632_v27  ;;  %2396 = vmatpush3.bf16.msra.mxu0 %v2633_v28 }
 0x9f7   : > { %2375 = vmatprep.subr.bf16.mxu1 %v2634_v29  ;;  %2397 = vmatprep.subr.bf16.mxu0 %v2635_v31 }
 0x9fa   : > { %2376 = vmatpush3.bf16.msra.mxu1 %v2636_v32  ;;  %2398 = vmatpush3.bf16.msra.mxu0 %v2637_v33 }
 0x9fb   : > { %2377 = vmatprep.subr.bf16.mxu1 %v2638_v34  ;;  %2399 = vmatprep.subr.bf16.mxu0 %v2639_v35 }
 0x9fe   : > { %2378 = vmatpush3.bf16.msra.mxu1 %v2640_v36  ;;  %2400 = vmatpush3.bf16.msra.mxu0 %v2641_v37 }
 0x9ff   : > { %2379 = vmatprep.subr.bf16.mxu1 %v2642_v38  ;;  %2401 = vmatprep.subr.bf16.mxu0 %v2643_v39 }
 0xa02   : > { %2380 = vmatpush3.bf16.msra.mxu1 %v2644_v40  ;;  %2402 = vmatpush3.bf16.msra.mxu0 %v2645_v41 }
 0xab8   : > { %v1676_v47 = vpop.f32.mrb[28].mxu1  ;;  %v1719_v48 = vpop.f32.mrb[16].mxu0 }
 0xab9   : > { %v3282_v49 = vadd.f32 %v1676_v47, %v1465_v44  ;;  %v3284_v50 = vadd.f32 %v1719_v48, %v1473_v4  ;;  %v1678_v51 = vpop.f32.mrb[29].mxu1  ;;  %v1721_v53 = vpop.f32.mrb[17].mxu0 }
 0xaba   : > { %v3286_v57 = vadd.f32 %v1678_v51, %v1469_v45  ;;  %v3288_v60 = vadd.f32 %v1721_v53, %v1477_v46  ;;  %v1680_v55 = vpop.f32.mrb[30].mxu1  ;;  %v1723_v61 = vpop.f32.mrb[18].mxu0 }
 0xabb   : > { %v2286_v56 = vmul.f32 -1.702, %v3282_v49  ;;  %v2288_v54 = vmul.f32 -1.702, %v3284_v50  ;;  %v1681_v58 = vadd.f32 %v1680_v55, %v1465_v44  ;;  %v1724_v62 = vadd.f32 %v1723_v61, %v1473_v4  ;;  %v1682_v63 = vpop.f32.mrb[31].mxu1  ;;  %v1725_v0 = vpop.f32.mrb[19].mxu0 }
 0xabc   : > { %v2287_v1 = vmul.f32 -1.702, %v3286_v57  ;;  %v2289_v59 = vmul.f32 -1.702, %v3288_v60  ;;  %v1683_v2 = vadd.f32 %v1682_v63, %v1469_v45  ;;  %v1726_v3 = vadd.f32 %v1725_v0, %v1477_v46 }
 0xabd   : > { %v1744_v5 = vmul.f32 1.442695, %v2286_v56  ;;  %v1748_v52 = vmul.f32 1.442695, %v2288_v54  ;;  %v2290_v14 = vmul.f32 -1.702, %v1681_v58 }
 0xabe   : > { %v1746_v7 = vmul.f32 1.442695, %v2287_v1  ;;  %v1750_v8 = vmul.f32 1.442695, %v2289_v59  ;;  %v2292_v30 = vmul.f32 -1.702, %v1724_v62 }
 0xabf   : > { %2686 = vpow2.f32 %v1744_v5  ;;  %v1752_v10 = vmul.f32 1.442695, %v2290_v14  ;;  %v2291_v11 = vmul.f32 -1.702, %v1683_v2  ;;  %v2293_v12 = vmul.f32 -1.702, %v1726_v3 }
 0xac0   : > { %2688 = vpow2.f32 %v1748_v52  ;;  %v1756_v13 = vmul.f32 1.442695, %v2292_v30 }
 0xac1   : > { %2690 = vpow2.f32 %v1746_v7  ;;  %v1754_v15 = vmul.f32 1.442695, %v2291_v11  ;;  %v1758_v16 = vmul.f32 1.442695, %v2293_v12 }
 0xac2   : > { %2692 = vpow2.f32 %v1750_v8 }
 0xac3   : > { %2694 = vpow2.f32 %v1752_v10 }
 0xac4   : > { %2696 = vpow2.f32 %v1756_v13 }
 0xac5   : > { %2698 = vpow2.f32 %v1754_v15 }
 0xac6   : > { %2700 = vpow2.f32 %v1758_v16 }
 0xac9   : > { %v2687_v17 = vpop.eup %2686 }
 0xaca   : > { %v2689_v18 = vpop.eup %2688  ;;  %v1760_v19 = vadd.f32 1.0, %v2687_v17 }
 0xacb   : > { %v2691_v20 = vpop.eup %2690  ;;  %v1762_v21 = vadd.f32 1.0, %v2689_v18 }
 0xacc   : > { %v2693_v22 = vpop.eup %2692  ;;  %2702 = vrcp.f32 %v1760_v19  ;;  %v1761_v23 = vadd.f32 1.0, %v2691_v20 }
 0xacd   : > { %v2695_v24 = vpop.eup %2694  ;;  %2704 = vrcp.f32 %v1762_v21  ;;  %v1763_v25 = vadd.f32 1.0, %v2693_v22 }
 0xace   : > { %v2697_v26 = vpop.eup %2696  ;;  %2706 = vrcp.f32 %v1761_v23  ;;  %v1764_v27 = vadd.f32 1.0, %v2695_v24 }
 0xacf   : > { %v2699_v28 = vpop.eup %2698  ;;  %2708 = vrcp.f32 %v1763_v25  ;;  %v1766_v29 = vadd.f32 1.0, %v2697_v26 }
 0xad0   : > { %v2701_v31 = vpop.eup %2700  ;;  %2710 = vrcp.f32 %v1764_v27  ;;  %v1765_v32 = vadd.f32 1.0, %v2699_v28 }
 0xad1   : > { %2712 = vrcp.f32 %v1766_v29  ;;  %v1767_v33 = vadd.f32 1.0, %v2701_v31 }
 0xad2   : > { %2714 = vrcp.f32 %v1765_v32 }
 0xad3   : > { %2716 = vrcp.f32 %v1767_v33 }
 0xad6   : > { %v2703_v34 = vpop.eup %2702 }
 0xad7   : > { %v2705_v35 = vpop.eup %2704  ;;  %v1784_v40 = vmul.f32 %v2703_v34, %v3282_v49 }
 0xad8   : > { %v2707_v36 = vpop.eup %2706  ;;  %v1786_v43 = vmul.f32 %v2705_v35, %v3284_v50  ;;  %v2294_v50 = vld [vmem:[%s3323_s12] ss:$0 sm:$0xff] }
 0xad9   : > { %v2709_v37 = vpop.eup %2708  ;;  %v1785_v45 = vmul.f32 %v2707_v36, %v3286_v57 }
 0xada   : > { %v2711_v38 = vpop.eup %2710  ;;  %v1787_v48 = vmul.f32 %v2709_v37, %v3288_v60 }
 0xadb   : > { %v2713_v39 = vpop.eup %2712  ;;  %v1788_v41 = vmul.f32 %v2711_v38, %v1681_v58 }
 0xadc   : > { %v2715_v42 = vpop.eup %2714  ;;  %v1790_v44 = vmul.f32 %v2713_v39, %v1724_v62 }
 0xadd   : > { %v2717_v4 = vpop.eup %2716  ;;  %v1792_v46 = vpack.c.bf16 %v1788_v41, %v1784_v40  ;;  %v1789_v47 = vmul.f32 %v2715_v42, %v1683_v2 }
 0xade   : > { %v1794_v51 = vpack.c.bf16 %v1790_v44, %v1786_v43  ;;  %v1791_v53 = vmul.f32 %v2717_v4, %v1726_v3 }
 0xadf   : > { %v1793_v55 = vpack.c.bf16 %v1789_v47, %v1785_v45 }
 0xae0   : > { %v1795_v61 = vpack.c.bf16 %v1791_v53, %v1787_v48 }
 0xae1   : > { %2091 = vmatprep.mubr.bf16.mxu1 %v1793_v55 }
 0xae2   : > { %2132 = vmatprep.mubr.bf16.mxu0 %v1795_v61  ;;  %2092 = vmatmul.mubr.bf16.vlgmr.msra.gmra.mrb[32].mxu1 %v1792_v46 }
 0xae3   : > { %2133 = vmatmul.mubr.bf16.vlgmr.msra.gmra.mrb[20].mxu0 %v1794_v51 }
 0xbb5   : > { %v2381_v49 = vpop.f32.mrb[32].mxu1 }
 0xbb6   : > { %v2403_v56 = vpop.f32.mrb[20].mxu0  ;;  %v2382_v57 = vpop.f32.mrb[33].mxu1 }
 0xbb7   : > { %v2383_v54 = vadd.f32 %v2382_v57, %v2381_v49  ;;  %v2404_v58 = vpop.f32.mrb[21].mxu0  ;;  %v2384_v62 = vpop.f32.mrb[34].mxu1 }
 0xbb8   : > { %v2405_v60 = vadd.f32 %v2404_v58, %v2403_v56  ;;  %v2406_v63 = vpop.f32.mrb[22].mxu0  ;;  %v2385_v0 = vpop.f32.mrb[35].mxu1 }
 0xbb9   : > { %v2094_v1 = vadd.f32 %v2383_v54, %v2294_v50  ;;  %v2386_v59 = vadd.f32 %v2385_v0, %v2384_v62  ;;  %v2407_v2 = vpop.f32.mrb[23].mxu0 }
 0xbba   : > { %v2408_v3 = vadd.f32 %v2407_v2, %v2406_v63 }
 0xbbb   : > { %v2135_v5 = vadd.f32 %v2405_v60, %v2094_v1  ;;  %v2097_v52 = vadd.f32 %v2386_v59, %v2294_v50 }
 0xbbd   : > { %v2141_v14 = vadd.f32 %v2135_v5, %v3055_v6  ;;  %v2138_v7 = vadd.f32 %v2408_v3, %v2097_v52 }
 0xbbf   : > { %2143 = vst [vmem:[%s440_s16] sm:$0xff] %v2141_v14  ;;  %v2142_v8 = vadd.f32 %v2138_v7, %v3058_v9 }
 0xbc1   : > { %2144 = vst [vmem:[%s440_s16 + $0x8] sm:$0xff] %v2142_v8 }
 0xbc2 PF: > { %s23_s25 = sadd.s32 1, %s2726_s25  }
 0xbc3   : > { %p20_p4 = scmp.ge.s32.totalorder %s23_s25, 4  }
 0xbc5   :  { %22 = sbr.rel (!%p20_p4) target bundleno = 1 (0x1), region = 102 }

</bundles_post_ra>
